<compile_context>
chip_gen: v7x
topology: tpu7x:2x2x1
jax: 0.10.0
libtpu: 0.0.40
codegen_flags: <defaults>
</compile_context>

<pallas_src>
import functools

import numpy as np
import jax
import jax.numpy as jnp
from jax.experimental import pallas as pl
from jax.experimental.pallas import tpu as pltpu

# ------------------------------ model dimensions ------------------------------
META_V_DIM = 8
META_V_EMB_DIM = 16
STATE_DIM = 16
ACTION_DIM = 6
DYN_HIDDEN = 128          # module default dynamic_hidden_dim=128 (lane-aligned)
BATCH = 8                 # multiple of 8 sublanes


def _cdiv(a, b):
    return -(-a // b)


def _round_up(x, m):
    return _cdiv(x, m) * m


def _choose_block(batch, max_block=256):
    """Batch block: multiple of 8, minimal padding, >=2 grid blocks when possible
    (v7x megacore), capped at 256 for v5e's 16 MiB scoped-VMEM default."""
    b8 = _round_up(max(batch, 1), 8)
    if b8 <= 16:
        return b8
    n_blocks = max(2, _cdiv(b8, max_block))
    return _round_up(_cdiv(b8, n_blocks), 8)


# --------------------------------- fused kernel --------------------------------
def _fused_ac_kernel(meta_ref, state_ref, wembt_ref, rs_ref, hw1_ref, wh_ref, out_ref,
                     *, emb_dim, state_dim, dyn_hidden, action_dim):
    f32 = jnp.float32
    S, D, A = state_dim, dyn_hidden, action_dim
    E2p = 2 * emb_dim + 1            # [actor emb | critic emb | 1]

    meta = meta_ref[...]             # [BB, M+1]  (trailing ones column folds b_emb)
    state = state_ref[...]           # [BB, S]

    # ---- meta-v embedding, pre-tiled S times along lanes (biases folded) ---------
    emb_tile = jnp.dot(meta, wembt_ref[...], preferred_element_type=f32)   # [BB, S*E2p]
    emb_aug = emb_tile[:, :E2p]                                            # [BB, E2p]

    # ---- hyper heads: [b1 | actor W2 o-major | critic W2 | b2]; biases + 1/sqrt
    #      scales already folded into the packed weights ---------------------------
    heads = jnp.dot(emb_aug, wh_ref[...], preferred_element_type=f32)      # [BB, P]

    # ---- dynamic layer 1 as ONE MXU matmul over the (state x emb) outer product --
    state_exp = jnp.dot(state, rs_ref[...], preferred_element_type=f32)    # [BB, S*E2p]
    u = state_exp * emb_tile                                               # u[b,s*E2p+e]
    h1 = jnp.dot(u, hw1_ref[...], preferred_element_type=f32)              # [BB, 2D]

    O_B1 = 0
    O_W2A = 2 * D
    O_W2C = O_W2A + A * D
    O_B2 = O_W2C + D

    hcat = jnp.maximum(h1 + heads[:, O_B1:O_B1 + 2 * D], 0.0)              # [BB, 2D]
    h_a = hcat[:, :D]                # actor hidden  [BB, D]
    h_c = hcat[:, D:]                # critic hidden [BB, D]

    # ---- dynamic layer 2 (o-major W2 -> 128-lane-aligned slices + lane reduce) ----
    cols = []
    for o in range(A):
        w2o = heads[:, O_W2A + o * D:O_W2A + (o + 1) * D]                  # [BB, D]
        cols.append(jnp.sum(h_a * w2o, axis=1, keepdims=True))
    logits = jnp.concatenate(cols, axis=1) + heads[:, O_B2:O_B2 + A]       # [BB, A]

    w2c = heads[:, O_W2C:O_W2C + D]
    value = (jnp.sum(h_c * w2c, axis=1, keepdims=True)
             + heads[:, O_B2 + A:O_B2 + A + 1])                            # [BB, 1]

    # ---- categorical stats fused in-kernel (log_softmax + entropy) ---------------
    m = jnp.max(logits, axis=1, keepdims=True)
    ex = jnp.exp(logits - m)
    sumex = jnp.sum(ex, axis=1, keepdims=True)
    logp = logits - m - jnp.log(sumex)                                     # [BB, A]
    probs = ex / sumex
    entropy = -jnp.sum(probs * logp, axis=1, keepdims=True)                # [BB, 1]

    # ---- lane-dense [BB,128] output: [log_probs | entropy | value | logits | 0..] -
    out_ref[...] = jnp.zeros_like(out_ref)
    out_ref[:, 0:A] = logp
    out_ref[:, A:A + 1] = entropy
    out_ref[:, A + 1:A + 2] = value
    out_ref[:, A + 2:2 * A + 2] = logits


# ------------------------- parameter init (torch-like) -------------------------
def _init_linear(key, fan_in, fan_out):
    # Matches PyTorch nn.Linear default: U(-1/sqrt(fan_in), 1/sqrt(fan_in)); stored [in, out].
    kw, kb = jax.random.split(key)
    bound = 1.0 / float(np.sqrt(fan_in))
    w = jax.random.uniform(kw, (fan_in, fan_out), jnp.float32, -bound, bound)
    b = jax.random.uniform(kb, (1, fan_out), jnp.float32, -bound, bound)
    return w, b


def init_hyper_params(key, meta_dim, emb_dim, state_dim, out_dim, dyn_hidden):
    k = jax.random.split(key, 5)
    p = {}
    p["emb_w"], p["emb_b"] = _init_linear(k[0], meta_dim, emb_dim)
    p["hw1_w"], p["hw1_b"] = _init_linear(k[1], emb_dim, state_dim * dyn_hidden)
    p["hb1_w"], p["hb1_b"] = _init_linear(k[2], emb_dim, dyn_hidden)
    p["hw2_w"], p["hw2_b"] = _init_linear(k[3], emb_dim, dyn_hidden * out_dim)
    p["hb2_w"], p["hb2_b"] = _init_linear(k[4], emb_dim, out_dim)
    return p


# ----------------------- one-time packing (layout plumbing) --------------------
def pack_actor_critic(actor_p, critic_p, *, meta_dim, emb_dim, state_dim, action_dim,
                      dyn_hidden, scale=True):
    E, S, D, A, M = emb_dim, state_dim, dyn_hidden, action_dim, meta_dim
    E2p = 2 * E + 1                 # [actor E | critic E | 1]
    SE = S * E2p
    f32 = jnp.float32
    assert 2 * A + 2 <= 128, "action_dim too large for the packed 128-lane output row"

    w1s = (1.0 / float(np.sqrt(S))) if scale else 1.0
    w2s = (1.0 / float(np.sqrt(D))) if scale else 1.0

    def z(*shape):
        return jnp.zeros(shape, f32)

    # ---- embedding weights, bias folded via trailing ones column, tiled S times ---
    wemb_aug = jnp.concatenate([
        jnp.concatenate([actor_p["emb_w"], critic_p["emb_w"], z(M, 1)], axis=1),
        jnp.concatenate([actor_p["emb_b"], critic_p["emb_b"], jnp.ones((1, 1), f32)], axis=1),
    ], axis=0)                                                    # [M+1, E2p]
    wemb_tiled = jnp.tile(wemb_aug, (1, S))                       # [M+1, S*E2p]

    # ---- 0/1 expansion: state_exp[b, s*E2p + e] = state[b, s] ---------------------
    rs = jnp.kron(jnp.eye(S, dtype=f32), jnp.ones((1, E2p), f32))  # [S, S*E2p]

    # ---- layer-1 hyper weights on the outer product, 1/sqrt(S) folded -------------
    a_w1 = actor_p["hw1_w"].reshape(E, S, D).transpose(1, 0, 2) * w1s    # [S, E, D]
    c_w1 = critic_p["hw1_w"].reshape(E, S, D).transpose(1, 0, 2) * w1s
    a_b1 = actor_p["hw1_b"].reshape(S, 1, D) * w1s
    c_b1 = critic_p["hw1_b"].reshape(S, 1, D) * w1s
    left = jnp.concatenate([a_w1, z(S, E, D), a_b1], axis=1)             # actor cols 0:D
    right = jnp.concatenate([z(S, E, D), c_w1, c_b1], axis=1)            # critic cols D:2D
    hw1_big = jnp.concatenate([left, right], axis=2).reshape(SE, 2 * D)  # [SE, 2D]

    # ---- heads weights: [b1 | actor W2 o-major | critic W2 | b2] ------------------
    seg_b1 = jnp.concatenate([
        jnp.concatenate([actor_p["hb1_w"], z(E, D)], axis=1),
        jnp.concatenate([z(E, D), critic_p["hb1_w"]], axis=1),
        jnp.concatenate([actor_p["hb1_b"], critic_p["hb1_b"]], axis=1),
    ], axis=0)                                                           # [E2p, 2D]

    a_w2 = actor_p["hw2_w"].reshape(E, D, A).transpose(0, 2, 1).reshape(E, A * D) * w2s
    a_w2b = actor_p["hw2_b"].reshape(D, A).T.reshape(1, A * D) * w2s
    seg_w2a = jnp.concatenate([a_w2, z(E, A * D), a_w2b], axis=0)        # [E2p, A*D]

    seg_w2c = jnp.concatenate([z(E, D), critic_p["hw2_w"] * w2s,
                               critic_p["hw2_b"] * w2s], axis=0)         # [E2p, D]

    padw = 128 - A - 1
    seg_b2 = jnp.concatenate([
        jnp.concatenate([actor_p["hb2_w"], z(E, 1), z(E, padw)], axis=1),
        jnp.concatenate([z(E, A), critic_p["hb2_w"], z(E, padw)], axis=1),
        jnp.concatenate([actor_p["hb2_b"], critic_p["hb2_b"], z(1, padw)], axis=1),
    ], axis=0)                                                           # [E2p, 128]

    w_heads = jnp.concatenate([seg_b1, seg_w2a, seg_w2c, seg_b2], axis=1)
    P = 2 * D + A * D + D + 128
    assert w_heads.shape == (E2p, P)
    assert hw1_big.shape == (SE, 2 * D)

    return dict(wemb_tiled=wemb_tiled, rs=rs, hw1=hw1_big, w_heads=w_heads,
                meta_dim=M, emb_dim=E, state_dim=S, action_dim=A,
                dyn_hidden=D, scale=scale)


# ----------------------------- fused forward wrapper ---------------------------
def hyper_ac_forward(packed, meta_v, state, *, block_b=None):
    """Single pallas_call computing actor log_probs/logits, entropy and critic value."""
    B, M = meta_v.shape
    S = packed["state_dim"]
    A = packed["action_dim"]
    D = packed["dyn_hidden"]
    E = packed["emb_dim"]
    E2p = 2 * E + 1
    SE = S * E2p
    P = packed["w_heads"].shape[1]
    assert state.shape == (B, S) and M == packed["meta_dim"]

    # ones column folds the embedding bias into the first matmul (K is tiny; the
    # extra row rides for free through the MXU).
    meta_aug = jnp.concatenate(
        [meta_v.astype(jnp.float32), jnp.ones((B, 1), jnp.float32)], axis=1)   # [B, M+1]
    state = state.astype(jnp.float32)

    BB = block_b or _choose_block(B)
    Bp = _round_up(B, BB)
    if Bp != B:
        meta_aug = jnp.pad(meta_aug, ((0, Bp - B), (0, 0)))
        state = jnp.pad(state, ((0, Bp - B), (0, 0)))

    kernel = functools.partial(_fused_ac_kernel, emb_dim=E, state_dim=S,
                               dyn_hidden=D, action_dim=A)

    out = pl.pallas_call(
        kernel,
        out_shape=jax.ShapeDtypeStruct((Bp, 128), jnp.float32),
        grid_spec=pltpu.PrefetchScalarGridSpec(
            num_scalar_prefetch=0,
            grid=(Bp // BB,),
            in_specs=[
                pl.BlockSpec((BB, M + 1), lambda i: (i, 0)),      # [meta_v | 1]
                pl.BlockSpec((BB, S), lambda i: (i, 0)),          # state
                pl.BlockSpec((M + 1, SE), lambda i: (0, 0)),      # tiled embedding W (+bias row)
                pl.BlockSpec((S, SE), lambda i: (0, 0)),          # 0/1 state expansion
                pl.BlockSpec((SE, 2 * D), lambda i: (0, 0)),      # layer-1 hyper W (scaled)
                pl.BlockSpec((E2p, P), lambda i: (0, 0)),         # packed head W (scaled, +bias row)
            ],
            out_specs=pl.BlockSpec((BB, 128), lambda i: (i, 0)),
        ),
        compiler_params=pltpu.CompilerParams(
            dimension_semantics=("parallel",)),
    )(meta_aug, state, packed["wemb_tiled"], packed["rs"], packed["hw1"], packed["w_heads"])

    out = out[:B]
    logp = out[:, :A]                    # log_softmax(logits)
    entropy = out[:, A]                  # [B]
    value = out[:, A + 1:A + 2]          # [B, 1]
    logits = out[:, A + 2:2 * A + 2]     # [B, A]
    return logits, logp, entropy, value


# --------------------------- HyperACEmbedInput1Layer API -----------------------
def act(packed, meta_v, state, key, ret_prob=False):
    logits, logp, _, _ = hyper_ac_forward(packed, meta_v, state)
    action = jax.random.categorical(key, logits, axis=-1)
    action_logprob = jnp.take_along_axis(logp, action[:, None], axis=1)[:, 0]
    if ret_prob:
        probs = jnp.exp(logp)
        return action, action_logprob, probs
    return action, action_logprob


def evaluate(packed, meta_v, state, action):
    _, logp, entropy, value = hyper_ac_forward(packed, meta_v, state)
    action_logprobs = jnp.take_along_axis(logp, action[:, None], axis=1)[:, 0]
    return action_logprobs, value, entropy

# TODO(synk): get_dynamic_weights() (returning the generated W1/b1/W2/b2) is not exposed;
#             it is just the `heads` intermediate of the kernel and not needed for forward.


# ------------------------------ pure-JAX reference -----------------------------
def _ref_forward(p, meta_v, state, out_dim, dyn_hidden, scale):
    S = state.shape[1]
    D = dyn_hidden
    emb = meta_v @ p["emb_w"] + p["emb_b"]
    w1 = (emb @ p["hw1_w"] + p["hw1_b"]).reshape(-1, S, D)
    b1 = emb @ p["hb1_w"] + p["hb1_b"]
    w2 = (emb @ p["hw2_w"] + p["hw2_b"]).reshape(-1, D, out_dim)
    b2 = emb @ p["hb2_w"] + p["hb2_b"]
    s1 = 1.0 / float(np.sqrt(S)) if scale else 1.0
    s2 = 1.0 / float(np.sqrt(D)) if scale else 1.0
    h = jax.nn.relu(jnp.einsum("bs,bsd->bd", state, w1) * s1 + b1)
    return jnp.einsum("bd,bdo->bo", h, w2) * s2 + b2


# ------------------------------------ main -------------------------------------
if __name__ == "__main__":
    root = jax.random.PRNGKey(0)
    k_actor, k_critic, k_meta, k_state, k_act, k_sample, k_meta2, k_state2 = \
        jax.random.split(root, 8)

    actor_params = init_hyper_params(k_actor, META_V_DIM, META_V_EMB_DIM,
                                     STATE_DIM, ACTION_DIM, DYN_HIDDEN)
    critic_params = init_hyper_params(k_critic, META_V_DIM, META_V_EMB_DIM,
                                      STATE_DIM, 1, DYN_HIDDEN)
    packed = pack_actor_critic(actor_params, critic_params,
                               meta_dim=META_V_DIM, emb_dim=META_V_EMB_DIM,
                               state_dim=STATE_DIM, action_dim=ACTION_DIM,
                               dyn_hidden=DYN_HIDDEN, scale=True)

    meta_v = jax.random.normal(k_meta, (BATCH, META_V_DIM), jnp.float32)
    state = jax.random.normal(k_state, (BATCH, STATE_DIM), jnp.float32)
    action = jax.random.randint(k_act, (BATCH,), 0, ACTION_DIM)

    # ---- act() / evaluate() paths (small batch, single grid block) ----
    a, logp_a = act(packed, meta_v, state, k_sample)
    action_logprobs, state_values, dist_entropy = evaluate(packed, meta_v, state, action)
    logits, logp, entropy, value = hyper_ac_forward(packed, meta_v, state)

    jax.block_until_ready((a, logp_a, action_logprobs, state_values, dist_entropy,
                           logits, value))

    assert a.shape == (BATCH,)
    assert logp_a.shape == (BATCH,)
    assert action_logprobs.shape == (BATCH,)
    assert state_values.shape == (BATCH, 1)
    assert dist_entropy.shape == (BATCH,)
    assert bool(jnp.all(jnp.isfinite(logp_a)))
    assert bool(jnp.all(jnp.isfinite(state_values)))

    # ---- numerical cross-check against the pure-JAX reference ----
    ref_logits = _ref_forward(actor_params, meta_v, state, ACTION_DIM, DYN_HIDDEN, True)
    ref_value = _ref_forward(critic_params, meta_v, state, 1, DYN_HIDDEN, True)
    np.testing.assert_allclose(np.asarray(logits), np.asarray(ref_logits),
                               atol=5e-2, rtol=5e-2)
    np.testing.assert_allclose(np.asarray(value), np.asarray(ref_value),
                               atol=5e-2, rtol=5e-2)

    # ---- larger batch: exercises batch padding + multi-block grid (>=2 blocks) ----
    Bbig = 40
    meta_big = jax.random.normal(k_meta2, (Bbig, META_V_DIM), jnp.float32)
    state_big = jax.random.normal(k_state2, (Bbig, STATE_DIM), jnp.float32)
    logits_b, logp_b, ent_b, val_b = hyper_ac_forward(packed, meta_big, state_big)
    jax.block_until_ready((logits_b, logp_b, ent_b, val_b))
    assert logits_b.shape == (Bbig, ACTION_DIM)
    assert val_b.shape == (Bbig, 1)
    assert bool(jnp.all(jnp.isfinite(logits_b)))
    assert bool(jnp.all(jnp.isfinite(val_b)))

    print("KERNEL_OK")
</pallas_src>

<mosaic_0001>
module attributes {stable_mosaic.version = 11 : i64} {
  func.func @_fused_ac_kernel(%arg0: i32, %arg1: memref<8x9xf32, #tpu.memory_space<vmem>>, %arg2: memref<8x16xf32, #tpu.memory_space<vmem>>, %arg3: memref<9x528xf32, #tpu.memory_space<vmem>>, %arg4: memref<16x528xf32, #tpu.memory_space<vmem>>, %arg5: memref<528x256xf32, #tpu.memory_space<vmem>>, %arg6: memref<33x1280xf32, #tpu.memory_space<vmem>>, %arg7: memref<8x128xf32, #tpu.memory_space<vmem>>) attributes {dimension_semantics = [#tpu.dimension_semantics<parallel>], iteration_bounds = array<i64: 1>, scalar_prefetch = 0 : i64, scratch_operands = 0 : i64, tpu.core_type = #tpu.core_type<tc>, window_params = [{transform_indices = @transform_0, window_bounds = array<i64: 8, 9>}, {transform_indices = @transform_1, window_bounds = array<i64: 8, 16>}, {pipeline_mode = #tpu.pipeline_mode<synchronous>, transform_indices = @transform_2, window_bounds = array<i64: 9, 528>}, {pipeline_mode = #tpu.pipeline_mode<synchronous>, transform_indices = @transform_3, window_bounds = array<i64: 16, 528>}, {pipeline_mode = #tpu.pipeline_mode<synchronous>, transform_indices = @transform_4, window_bounds = array<i64: 528, 256>}, {pipeline_mode = #tpu.pipeline_mode<synchronous>, transform_indices = @transform_5, window_bounds = array<i64: 33, 1280>}, {transform_indices = @transform_6, window_bounds = array<i64: 8, 128>}]} {
    %c0 = arith.constant 0 : index
    %c0_0 = arith.constant 0 : index
    %0 = vector.load %arg1[%c0, %c0_0] : memref<8x9xf32, #tpu.memory_space<vmem>>, vector<8x9xf32>
    %c0_1 = arith.constant 0 : index
    %c0_2 = arith.constant 0 : index
    %1 = vector.load %arg2[%c0_1, %c0_2] : memref<8x16xf32, #tpu.memory_space<vmem>>, vector<8x16xf32>
    %c0_3 = arith.constant 0 : index
    %c0_4 = arith.constant 0 : index
    %2 = vector.load %arg3[%c0_3, %c0_4] : memref<9x528xf32, #tpu.memory_space<vmem>>, vector<9x528xf32>
    %cst = arith.constant dense<0.000000e+00> : vector<8x528xf32>
    %3 = tpu.matmul %0, %2, %cst {dimension_numbers = #tpu.dot_dimension_numbers<[1], [0], [0], [1], [0, 0, 1, 1], [], []>} : vector<8x9xf32>, vector<9x528xf32>, vector<8x528xf32> -> vector<8x528xf32>
    %4 = vector.extract_strided_slice %3 {offsets = [0, 0], sizes = [8, 33], strides = [1, 1]} : vector<8x528xf32> to vector<8x33xf32>
    %c0_5 = arith.constant 0 : index
    %c0_6 = arith.constant 0 : index
    %5 = vector.load %arg6[%c0_5, %c0_6] : memref<33x1280xf32, #tpu.memory_space<vmem>>, vector<33x1280xf32>
    %cst_7 = arith.constant dense<0.000000e+00> : vector<8x1280xf32>
    %6 = tpu.matmul %4, %5, %cst_7 {dimension_numbers = #tpu.dot_dimension_numbers<[1], [0], [0], [1], [0, 0, 1, 1], [], []>} : vector<8x33xf32>, vector<33x1280xf32>, vector<8x1280xf32> -> vector<8x1280xf32>
    %c0_8 = arith.constant 0 : index
    %c0_9 = arith.constant 0 : index
    %7 = vector.load %arg4[%c0_8, %c0_9] : memref<16x528xf32, #tpu.memory_space<vmem>>, vector<16x528xf32>
    %cst_10 = arith.constant dense<0.000000e+00> : vector<8x528xf32>
    %8 = tpu.matmul %1, %7, %cst_10 {dimension_numbers = #tpu.dot_dimension_numbers<[1], [0], [0], [1], [0, 0, 1, 1], [], []>} : vector<8x16xf32>, vector<16x528xf32>, vector<8x528xf32> -> vector<8x528xf32>
    %9 = arith.mulf %8, %3 : vector<8x528xf32>
    %c0_11 = arith.constant 0 : index
    %c0_12 = arith.constant 0 : index
    %10 = vector.load %arg5[%c0_11, %c0_12] : memref<528x256xf32, #tpu.memory_space<vmem>>, vector<528x256xf32>
    %cst_13 = arith.constant dense<0.000000e+00> : vector<8x256xf32>
    %11 = tpu.matmul %9, %10, %cst_13 {dimension_numbers = #tpu.dot_dimension_numbers<[1], [0], [0], [1], [0, 0, 1, 1], [], []>} : vector<8x528xf32>, vector<528x256xf32>, vector<8x256xf32> -> vector<8x256xf32>
    %12 = vector.extract_strided_slice %6 {offsets = [0, 0], sizes = [8, 256], strides = [1, 1]} : vector<8x1280xf32> to vector<8x256xf32>
    %13 = arith.addf %11, %12 : vector<8x256xf32>
    %cst_14 = arith.constant 0.000000e+00 : f32
    %14 = vector.broadcast %cst_14 : f32 to vector<8x256xf32>
    %15 = arith.maximumf %13, %14 : vector<8x256xf32>
    %16 = vector.extract_strided_slice %15 {offsets = [0, 0], sizes = [8, 128], strides = [1, 1]} : vector<8x256xf32> to vector<8x128xf32>
    %17 = vector.extract_strided_slice %15 {offsets = [0, 128], sizes = [8, 128], strides = [1, 1]} : vector<8x256xf32> to vector<8x128xf32>
    %18 = vector.extract_strided_slice %6 {offsets = [0, 256], sizes = [8, 128], strides = [1, 1]} : vector<8x1280xf32> to vector<8x128xf32>
    %19 = arith.mulf %16, %18 : vector<8x128xf32>
    %cst_15 = arith.constant dense<0.000000e+00> : vector<8xf32>
    %20 = vector.multi_reduction <add>, %19, %cst_15 [1] : vector<8x128xf32> to vector<8xf32>
    %21 = vector.shape_cast %20 : vector<8xf32> to vector<8x1xf32>
    %22 = vector.extract_strided_slice %6 {offsets = [0, 384], sizes = [8, 128], strides = [1, 1]} : vector<8x1280xf32> to vector<8x128xf32>
    %23 = arith.mulf %16, %22 : vector<8x128xf32>
    %cst_16 = arith.constant dense<0.000000e+00> : vector<8xf32>
    %24 = vector.multi_reduction <add>, %23, %cst_16 [1] : vector<8x128xf32> to vector<8xf32>
    %25 = vector.shape_cast %24 : vector<8xf32> to vector<8x1xf32>
    %26 = vector.extract_strided_slice %6 {offsets = [0, 512], sizes = [8, 128], strides = [1, 1]} : vector<8x1280xf32> to vector<8x128xf32>
    %27 = arith.mulf %16, %26 : vector<8x128xf32>
    %cst_17 = arith.constant dense<0.000000e+00> : vector<8xf32>
    %28 = vector.multi_reduction <add>, %27, %cst_17 [1] : vector<8x128xf32> to vector<8xf32>
    %29 = vector.shape_cast %28 : vector<8xf32> to vector<8x1xf32>
    %30 = vector.extract_strided_slice %6 {offsets = [0, 640], sizes = [8, 128], strides = [1, 1]} : vector<8x1280xf32> to vector<8x128xf32>
    %31 = arith.mulf %16, %30 : vector<8x128xf32>
    %cst_18 = arith.constant dense<0.000000e+00> : vector<8xf32>
    %32 = vector.multi_reduction <add>, %31, %cst_18 [1] : vector<8x128xf32> to vector<8xf32>
    %33 = vector.shape_cast %32 : vector<8xf32> to vector<8x1xf32>
    %34 = vector.extract_strided_slice %6 {offsets = [0, 768], sizes = [8, 128], strides = [1, 1]} : vector<8x1280xf32> to vector<8x128xf32>
    %35 = arith.mulf %16, %34 : vector<8x128xf32>
    %cst_19 = arith.constant dense<0.000000e+00> : vector<8xf32>
    %36 = vector.multi_reduction <add>, %35, %cst_19 [1] : vector<8x128xf32> to vector<8xf32>
    %37 = vector.shape_cast %36 : vector<8xf32> to vector<8x1xf32>
    %38 = vector.extract_strided_slice %6 {offsets = [0, 896], sizes = [8, 128], strides = [1, 1]} : vector<8x1280xf32> to vector<8x128xf32>
    %39 = arith.mulf %16, %38 : vector<8x128xf32>
    %cst_20 = arith.constant dense<0.000000e+00> : vector<8xf32>
    %40 = vector.multi_reduction <add>, %39, %cst_20 [1] : vector<8x128xf32> to vector<8xf32>
    %41 = vector.shape_cast %40 : vector<8xf32> to vector<8x1xf32>
    %42 = tpu.concatenate %21, %25, %29, %33, %37, %41 in 1 : vector<8x1xf32>, vector<8x1xf32>, vector<8x1xf32>, vector<8x1xf32>, vector<8x1xf32>, vector<8x1xf32> -> vector<8x6xf32>
    %43 = vector.extract_strided_slice %6 {offsets = [0, 1152], sizes = [8, 6], strides = [1, 1]} : vector<8x1280xf32> to vector<8x6xf32>
    %44 = arith.addf %42, %43 : vector<8x6xf32>
    %45 = vector.extract_strided_slice %6 {offsets = [0, 1024], sizes = [8, 128], strides = [1, 1]} : vector<8x1280xf32> to vector<8x128xf32>
    %46 = arith.mulf %17, %45 : vector<8x128xf32>
    %cst_21 = arith.constant dense<0.000000e+00> : vector<8xf32>
    %47 = vector.multi_reduction <add>, %46, %cst_21 [1] : vector<8x128xf32> to vector<8xf32>
    %48 = vector.shape_cast %47 : vector<8xf32> to vector<8x1xf32>
    %49 = vector.extract_strided_slice %6 {offsets = [0, 1158], sizes = [8, 1], strides = [1, 1]} : vector<8x1280xf32> to vector<8x1xf32>
    %50 = arith.addf %48, %49 : vector<8x1xf32>
    %cst_22 = arith.constant dense<0xFF800000> : vector<8xf32>
    %51 = vector.multi_reduction <maximumf>, %44, %cst_22 [1] : vector<8x6xf32> to vector<8xf32>
    %52 = vector.shape_cast %51 : vector<8xf32> to vector<8x1xf32>
    %53 = vector.broadcast %52 : vector<8x1xf32> to vector<8x6xf32>
    %54 = arith.subf %44, %53 : vector<8x6xf32>
    %55 = math.exp %54 : vector<8x6xf32>
    %cst_23 = arith.constant dense<0.000000e+00> : vector<8xf32>
    %56 = vector.multi_reduction <add>, %55, %cst_23 [1] : vector<8x6xf32> to vector<8xf32>
    %57 = vector.shape_cast %56 : vector<8xf32> to vector<8x1xf32>
    %58 = vector.broadcast %52 : vector<8x1xf32> to vector<8x6xf32>
    %59 = arith.subf %44, %58 : vector<8x6xf32>
    %60 = math.log %57 : vector<8x1xf32>
    %61 = vector.broadcast %60 : vector<8x1xf32> to vector<8x6xf32>
    %62 = arith.subf %59, %61 : vector<8x6xf32>
    %63 = vector.broadcast %57 : vector<8x1xf32> to vector<8x6xf32>
    %64 = arith.divf %55, %63 : vector<8x6xf32>
    %65 = arith.mulf %64, %62 : vector<8x6xf32>
    %cst_24 = arith.constant dense<0.000000e+00> : vector<8xf32>
    %66 = vector.multi_reduction <add>, %65, %cst_24 [1] : vector<8x6xf32> to vector<8xf32>
    %67 = vector.shape_cast %66 : vector<8xf32> to vector<8x1xf32>
    %cst_25 = arith.constant 0.000000e+00 : f32
    %68 = vector.broadcast %cst_25 : f32 to vector<8x1xf32>
    %69 = arith.subf %68, %67 : vector<8x1xf32>
    %cst_26 = arith.constant 0.000000e+00 : f32
    %70 = vector.broadcast %cst_26 : f32 to vector<8x128xf32>
    %c0_27 = arith.constant 0 : index
    %c0_28 = arith.constant 0 : index
    %71 = vector.load %arg7[%c0_27, %c0_28] : memref<8x128xf32, #tpu.memory_space<vmem>>, vector<8x128xf32>
    tpu.vector_store %arg7[%c0_27, %c0_28], %70 {strides = array<i32>} : memref<8x128xf32, #tpu.memory_space<vmem>>, vector<8x128xf32>,
    %c0_29 = arith.constant 0 : index
    %c0_30 = arith.constant 0 : index
    %72 = vector.load %arg7[%c0_29, %c0_30] : memref<8x128xf32, #tpu.memory_space<vmem>>, vector<8x6xf32>
    tpu.vector_store %arg7[%c0_29, %c0_30], %62 {strides = array<i32>} : memref<8x128xf32, #tpu.memory_space<vmem>>, vector<8x6xf32>,
    %c0_31 = arith.constant 0 : index
    %c6 = arith.constant 6 : index
    %73 = vector.load %arg7[%c0_31, %c6] : memref<8x128xf32, #tpu.memory_space<vmem>>, vector<8x1xf32>
    tpu.vector_store %arg7[%c0_31, %c6], %69 {strides = array<i32>} : memref<8x128xf32, #tpu.memory_space<vmem>>, vector<8x1xf32>,
    %c0_32 = arith.constant 0 : index
    %c7 = arith.constant 7 : index
    %74 = vector.load %arg7[%c0_32, %c7] : memref<8x128xf32, #tpu.memory_space<vmem>>, vector<8x1xf32>
    tpu.vector_store %arg7[%c0_32, %c7], %50 {strides = array<i32>} : memref<8x128xf32, #tpu.memory_space<vmem>>, vector<8x1xf32>,
    %c0_33 = arith.constant 0 : index
    %c8 = arith.constant 8 : index
    %75 = vector.load %arg7[%c0_33, %c8] : memref<8x128xf32, #tpu.memory_space<vmem>>, vector<8x6xf32>
    tpu.vector_store %arg7[%c0_33, %c8], %44 {strides = array<i32>} : memref<8x128xf32, #tpu.memory_space<vmem>>, vector<8x6xf32>,
    return
  }
  func.func @transform_0(%arg0: i32) -> (i32, i32) {
    %c0_i32 = arith.constant 0 : i32
    %c0_i32_0 = arith.constant 0 : i32
    return %arg0, %c0_i32 : i32, i32
  }
  func.func @transform_1(%arg0: i32) -> (i32, i32) {
    %c0_i32 = arith.constant 0 : i32
    %c0_i32_0 = arith.constant 0 : i32
    return %arg0, %c0_i32 : i32, i32
  }
  func.func @transform_2(%arg0: i32) -> (i32, i32) {
    %c0_i32 = arith.constant 0 : i32
    %c0_i32_0 = arith.constant 0 : i32
    %c0_i32_1 = arith.constant 0 : i32
    return %c0_i32, %c0_i32_0 : i32, i32
  }
  func.func @transform_3(%arg0: i32) -> (i32, i32) {
    %c0_i32 = arith.constant 0 : i32
    %c0_i32_0 = arith.constant 0 : i32
    %c0_i32_1 = arith.constant 0 : i32
    return %c0_i32, %c0_i32_0 : i32, i32
  }
  func.func @transform_4(%arg0: i32) -> (i32, i32) {
    %c0_i32 = arith.constant 0 : i32
    %c0_i32_0 = arith.constant 0 : i32
    %c0_i32_1 = arith.constant 0 : i32
    return %c0_i32, %c0_i32_0 : i32, i32
  }
  func.func @transform_5(%arg0: i32) -> (i32, i32) {
    %c0_i32 = arith.constant 0 : i32
    %c0_i32_0 = arith.constant 0 : i32
    %c0_i32_1 = arith.constant 0 : i32
    return %c0_i32, %c0_i32_0 : i32, i32
  }
  func.func @transform_6(%arg0: i32) -> (i32, i32) {
    %c0_i32 = arith.constant 0 : i32
    %c0_i32_0 = arith.constant 0 : i32
    return %arg0, %c0_i32 : i32, i32
  }
}

</mosaic_0001>

<bundles_post_ra>
// kernel: tpu_custom_call.1
= control target key start
LH: loop header
LB: loop body
LE: loop exit
PB: predicated region body
PF: predicated region fallthrough
CT: control target
= control target key end

     0   :  { %11 = vsyncpa [#allocation3], 0  ;;  %s2116_s0 = inlined_call_operand.hbm [shape: f32[8,9], index: 0, kind: input, shape index: {}]   ;;  %s2117_s1 = inlined_call_operand.hbm [shape: f32[8,16], index: 1, kind: input, shape index: {}]   ;;  %s2118_s2 = inlined_call_operand.hbm [shape: f32[9,528], index: 2, kind: input, shape index: {}]   ;;  %s2119_s3 = inlined_call_operand.hbm [shape: f32[16,528], index: 3, kind: input, shape index: {}]   ;;  %s2120_s4 = inlined_call_operand.hbm [shape: f32[528,256], index: 4, kind: input, shape index: {}]   ;;  %s2121_s5 = inlined_call_operand.hbm [shape: f32[33,1280], index: 5, kind: input, shape index: {}]   ;;  %s2122_s6 = inlined_call_operand.hbm [shape: f32[8,128], index: 6, kind: output, shape index: {}]  }
   0x1   :  { %12 = vsyncpa [#allocation6], 0 }
   0x2   :  { %13 = vsyncpa [#allocation9], 0 }
   0x3   :  { %14 = vsyncpa [#allocation12], 0 }
   0x4   :  { %15 = vsyncpa [#allocation4], 0  ;;  %s1894_s21 = smov [#allocation5]   ;;  %s1730_s25 = scalar_lea.hbm %s2117_s1, 128 }
   0x5   :  { %s32_s22 = sshll.u32 %s1894_s21, 4  ;;  %p1731_p0 = scmp.ne.s32.totalorder %s2117_s1, %s1730_s25  ;;  %s33_s22 = int_to_ptr.vmem [resolvable:$true] %s32_s22 }
   0x6   :  { %p1734_p1 = scmp.lt.u32.totalorder %s1730_s25, %s2117_s1 }
   0x8   :  { %p1736_p2 = pnand %p1734_p1, %p1731_p0 }
   0xa   :  { %1739 = shalt.err (!%p1736_p2)
}
   0xb   :  { %s1740_s30 = scalar_lea.vmem %s33_s22, 128  ;;  %p1745_p4 = scmp.lt.s32.totalorder %s33_s22, %s33_s22 }
   0xc   :  { %p1741_p3 = scmp.ne.s32.totalorder %s33_s22, %s1740_s30  ;;  %p1746_p5 = scmp.lt.s32.totalorder %s1740_s30, %s1740_s30 }
   0xe   :  { %p1747_p6 = por %p1746_p5, %p1745_p4 }
  0x10   :  { %p1748_p7 = pnand %p1747_p6, %p1741_p3 }
  0x12   :  { %1751 = shalt.err (!%p1748_p7)
}
  0x13   :  { %35 = dma.hbm_to_vmem [thread:$0]  %s2117_s1, 128, %s33_s22, [#allocation6]  }
  0x14   :  { %s1895_s9 = smov [#allocation8]   ;;  %s1896_s11 = smov [#allocation2]  }
  0x15   :  { %s53_s10 = sshll.u32 %s1895_s9, 4  ;;  %s22_s12 = sshll.u32 %s1896_s11, 4  ;;  %s54_s10 = int_to_ptr.vmem [resolvable:$true] %s53_s10  ;;  %s23_s12 = int_to_ptr.vmem [resolvable:$true] %s22_s12 }
  0x16   :  { %s1752_s15 = scalar_lea.hbm %s2119_s3, 1280 }
  0x17   :  { %p1753_p8 = scmp.ne.s32.totalorder %s2119_s3, %s1752_s15  ;;  %p1756_p9 = scmp.lt.u32.totalorder %s1752_s15, %s2119_s3 }
  0x19   :  { %p1758_p10 = pnand %p1756_p9, %p1753_p8 }
  0x1b   :  { %1761 = shalt.err (!%p1758_p10)
}
  0x1c   :  { %s1762_s1 = scalar_lea.vmem %s54_s10, 1280  ;;  %p1767_p12 = scmp.lt.s32.totalorder %s54_s10, %s54_s10 }
  0x1d   :  { %p1763_p11 = scmp.ne.s32.totalorder %s54_s10, %s1762_s1  ;;  %p1768_p13 = scmp.lt.s32.totalorder %s1762_s1, %s1762_s1 }
  0x1f   :  { %p1769_p0 = por %p1768_p13, %p1767_p12 }
  0x21   :  { %p1770_p1 = pnand %p1769_p0, %p1763_p11 }
  0x23   :  { %1773 = shalt.err (!%p1770_p1)
}
  0x24   :  { %s1897_s20 = smov 640   ;;  %s1898_s21 = smov 40  }
  0x25   :  { %59 = dma.hbm_to_vmem [thread:$0]  %s2119_s3, 1280, %s54_s10, [#allocation9], %s1897_s20, %s1897_s20, %s1898_s21  }
  0x26   :  { %s1774_s26 = scalar_lea.hbm %s2116_s0, 128 }
  0x27   :  { %p1775_p2 = scmp.ne.s32.totalorder %s2116_s0, %s1774_s26  ;;  %p1778_p3 = scmp.lt.u32.totalorder %s1774_s26, %s2116_s0 }
  0x29   :  { %p1780_p4 = pnand %p1778_p3, %p1775_p2 }
  0x2b   :  { %1783 = shalt.err (!%p1780_p4)
}
  0x2c   :  { %s1784_s7 = scalar_lea.vmem %s23_s12, 128  ;;  %p1789_p6 = scmp.lt.s32.totalorder %s23_s12, %s23_s12 }
  0x2d   :  { %p1785_p5 = scmp.ne.s32.totalorder %s23_s12, %s1784_s7  ;;  %p1790_p7 = scmp.lt.s32.totalorder %s1784_s7, %s1784_s7 }
  0x2f   :  { %p1791_p8 = por %p1790_p7, %p1789_p6 }
  0x31   :  { %p1792_p9 = pnand %p1791_p8, %p1785_p5 }
  0x33   :  { %1795 = shalt.err (!%p1792_p9)
}
  0x34   :  { %25 = dma.hbm_to_vmem [thread:$0]  %s2116_s0, 128, %s23_s12, [#allocation3]  }
  0x35   :  { %s1899_s9 = smov [#allocation7]   ;;  %s1900_s11 = smov [#allocation10]  }
  0x36   :  { %s41_s10 = sshll.u32 %s1899_s9, 4  ;;  %s65_s13 = sshll.u32 %s1900_s11, 4  ;;  %s42_s10 = int_to_ptr.vmem [resolvable:$true] %s41_s10  ;;  %s66_s13 = int_to_ptr.vmem [resolvable:$true] %s65_s13 }
  0x37   :  { %s1796_s16 = scalar_lea.hbm %s2118_s2, 1280 }
  0x38   :  { %p1797_p10 = scmp.ne.s32.totalorder %s2118_s2, %s1796_s16  ;;  %p1800_p11 = scmp.lt.u32.totalorder %s1796_s16, %s2118_s2 }
  0x3a   :  { %p1802_p12 = pnand %p1800_p11, %p1797_p10 }
  0x3c   :  { %1805 = shalt.err (!%p1802_p12)
}
  0x3d   :  { %s1806_s0 = scalar_lea.vmem %s42_s10, 1280  ;;  %p1811_p0 = scmp.lt.s32.totalorder %s42_s10, %s42_s10 }
  0x3e   :  { %p1807_p13 = scmp.ne.s32.totalorder %s42_s10, %s1806_s0  ;;  %p1812_p1 = scmp.lt.s32.totalorder %s1806_s0, %s1806_s0 }
  0x40   :  { %p1813_p2 = por %p1812_p1, %p1811_p0 }
  0x42   :  { %p1814_p3 = pnand %p1813_p2, %p1807_p13 }
  0x44   :  { %1817 = shalt.err (!%p1814_p3)
}
  0x45   :  { %47 = dma.hbm_to_vmem [thread:$0]  %s2118_s2, 1280, %s42_s10, [#allocation6], %s1897_s20, %s1897_s20, %s1898_s21  }
  0x46   :  { %s1818_s25 = scalar_lea.hbm %s2120_s4, 16896 }
  0x47   :  { %p1819_p4 = scmp.ne.s32.totalorder %s2120_s4, %s1818_s25  ;;  %p1822_p5 = scmp.lt.u32.totalorder %s1818_s25, %s2120_s4 }
  0x49   :  { %p1824_p6 = pnand %p1822_p5, %p1819_p4 }
  0x4b   :  { %1827 = shalt.err (!%p1824_p6)
}
  0x4c   :  { %s1828_s30 = scalar_lea.vmem %s66_s13, 16896  ;;  %p1833_p8 = scmp.lt.s32.totalorder %s66_s13, %s66_s13 }
  0x4d   :  { %p1829_p7 = scmp.ne.s32.totalorder %s66_s13, %s1828_s30  ;;  %p1834_p9 = scmp.lt.s32.totalorder %s1828_s30, %s1828_s30 }
  0x4f   :  { %p1835_p10 = por %p1834_p9, %p1833_p8 }
  0x51   :  { %p1836_p11 = pnand %p1835_p10, %p1829_p7 }
  0x53   :  { %1839 = shalt.err (!%p1836_p11)
}
  0x54   :  { %s1901_s2 = smov 256   ;;  %s1902_s20 = smov 16  }
  0x55   :  { %71 = dma.hbm_to_vmem [thread:$0]  %s2120_s4, 16896, %s66_s13, [#allocation9], %s1901_s2, %s1901_s2, %s1902_s20  }
  0x56   :  { %s1903_s3 = smov [#allocation11]   ;;  %s1840_s11 = scalar_lea.hbm %s2121_s5, 6400 }
  0x57   :  { %s77_s8 = sshll.u32 %s1903_s3, 4  ;;  %p1841_p12 = scmp.ne.s32.totalorder %s2121_s5, %s1840_s11  ;;  %s78_s8 = int_to_ptr.vmem [resolvable:$true] %s77_s8 }
  0x58   :  { %p1844_p13 = scmp.lt.u32.totalorder %s1840_s11, %s2121_s5 }
  0x5a   :  { %p1846_p0 = pnand %p1844_p13, %p1841_p12 }
  0x5c   :  { %1849 = shalt.err (!%p1846_p0)
}
  0x5d   :  { %s1850_s18 = scalar_lea.vmem %s78_s8, 6400  ;;  %p1855_p2 = scmp.lt.s32.totalorder %s78_s8, %s78_s8 }
  0x5e   :  { %p1851_p1 = scmp.ne.s32.totalorder %s78_s8, %s1850_s18  ;;  %p1856_p3 = scmp.lt.s32.totalorder %s1850_s18, %s1850_s18 }
  0x60   :  { %p1857_p4 = por %p1856_p3, %p1855_p2 }
  0x62   :  { %p1858_p5 = pnand %p1857_p4, %p1851_p1 }
  0x64   :  { %1861 = shalt.err (!%p1858_p5)
}
  0x65   :  { %s1904_s4 = smov 1280   ;;  %s1905_s13 = smov 80  }
  0x66   :  { %83 = dma.hbm_to_vmem [thread:$0]  %s2121_s5, 6400, %s78_s8, [#allocation12], %s1904_s4, %s1904_s4, %s1905_s13  }
  0x67   :  { %1884 = dma.done.wait [#allocation3], 128  }
  0x68   :  { %1885 = vsyncadd [#allocation3], 4294967168 }
  0x69   :  { %1886 = dma.done.wait [#allocation6], 1408  }
  0x6a   :  { %1887 = vsyncadd [#allocation6], 4294965888 }
  0x6b   :  { %1888 = dma.done.wait [#allocation9], 18176  }
  0x6c   :  { %1889 = vsyncadd [#allocation9], 4294949120 }
  0x6d   :  { %1890 = dma.done.wait [#allocation12], 6400  }
  0x6e   :  { %1891 = vsyncadd [#allocation12], 4294960896  ;;  %v1906_v0 = vmov 0.0   ;;  %vm118_vm0 = vcmask 1040384   ;;  %vm1907_vm1 = vmmov 1   ;;  %v105_v2 = vld [vmem:[#allocation7 + $0x8] sm:$0xff] }
  0x6f   :  { %198 = vmatprep.mubr.f32.mxu0 %v1906_v0  ;;  %1419 = vst [vmem:[#allocation13] sm:$0xff] %v1906_v0  ;;  %494 = vmatprep.mubr.f32.mxu1 %v1906_v0  ;;  %vm2030_vm2 = vmpackc.low %vm118_vm0, %vm1907_vm1  ;;  %v110_v3 = vld [vmem:[#allocation7 + $0x30] sm:$0x1]  ;;  %v104_v4 = vld [vmem:[#allocation7] sm:$0xff]  ;;  %vm114_vm3 = vcmask 72704   ;;  %v1908_v31 = vmov 0.0|0.0  }
  0x70   :  { %v1500_v5 = vpack.c.bf16 %v110_v3, %v105_v2  ;;  %v109_v6 = vld [vmem:[#allocation7 + $0x28] sm:$0x1]  ;;  %v107_v7 = vld [vmem:[#allocation7 + $0x18] sm:$0xff]  ;;  %v112_v9 = vld [vmem:[#allocation7 + $0x40] sm:$0x1]  ;;  %vm1909_vm4 = vmmov 0  }
  0x71   :  { %v1503_v8 = vpack.c.bf16 %v109_v6, %v104_v4  ;;  %v106_v10 = vld [vmem:[#allocation7 + $0x10] sm:$0xff]  ;;  %v111_v11 = vld [vmem:[#allocation7 + $0x38] sm:$0x1]  ;;  %v1506_v13 = vpack.c.bf16 %v112_v9, %v107_v7  ;;  %v347_v14 = vld [vmem:[#allocation11 + $0x8] sm:$0xff]  ;;  %vm396_vm5 = vcmask 269312   ;;  %vm795_vm6 = vcmask 130048  }
  0x72   :  { %1502 = vmatprep.subr.msk.bf16.mxu0 %vm2030_vm2, %v1500_v5  ;;  %v102_v12 = vld [vmem:[#allocation2] sm:$0xff]  ;;  %v1509_v15 = vpack.c.bf16 %v111_v11, %v106_v10  ;;  %v108_v16 = vld [vmem:[#allocation7 + $0x20] sm:$0xff]  ;;  %v113_v17 = vld [vmem:[#allocation7 + $0x48] sm:$0x1]  ;;  %vm1384_vm7 = vcmask 7168   ;;  %vm1386_vm8 = vcmask 15360  }
  0x73   :  { %1505 = vmatpush1.bf16.msk.msra.mxu0 %vm2030_vm2, %v1503_v8  ;;  %v357_v18 = vld [vmem:[#allocation11 + $0x58] sm:$0xff]  ;;  %v346_v21 = vld [vmem:[#allocation11] sm:$0xff]  ;;  %v356_v22 = vld [vmem:[#allocation11 + $0x50] sm:$0xff]  ;;  %v1513_v29 = vpack.c.bf16 %v113_v17, %v108_v16  ;;  %vm1388_vm9 = vcmask 23552   ;;  %vm1390_vm10 = vcmask 31744   ;;  %vm1392_vm11 = vcmask 39936  }
  0x74   :  { %1508 = vmatprep.subr.msk.bf16.mxu0 %vm2030_vm2, %v1506_v13  ;;  %v1516_v19 = vpack.c.bf16 %v357_v18, %v347_v14  ;;  %v349_v20 = vld [vmem:[#allocation11 + $0x18] sm:$0xff]  ;;  %v359_v23 = vld [vmem:[#allocation11 + $0x68] sm:$0xff]  ;;  %v1518_v24 = vpack.c.bf16 %v356_v22, %v346_v21  ;;  %v366_v28 = vld [vmem:[#allocation11 + $0xa0] sm:$0xff]  ;;  %vm1399_vm12 = vcmask 48128   ;;  %s1910_s5 = smov 1   ;;  %s1911_s0 = smov 8  }
  0x75   :  { %v367_v25 = vld [vmem:[#allocation11 + $0xa8] sm:$0xff]  ;;  %v377_v26 = vld [vmem:[#allocation11 + $0xf8] sm:$0xff]  ;;  %v376_v30 = vld [vmem:[#allocation11 + $0xf0] sm:$0xff]  ;;  %v1524_v32 = vpack.c.bf16 %v359_v23, %v349_v20  ;;  %vm1421_vm13 = vcmask 56368   ;;  %s1912_s12 = smov [#allocation13]   ;;  %vm1427_vm14 = vcmask 64568  }
  0x76   :  { %1455 = vmatmul.mubr.msk.f32.vlgmr.msra.gmra.mrb[0].mxu0 %vm114_vm3, %v102_v12  ;;  %1517 = vmatprep.subr.bf16.mxu1 %v1516_v19  ;;  %v1520_v27 = vpack.c.bf16 %v377_v26, %v367_v25  ;;  %v348_v33 = vld [vmem:[#allocation11 + $0x10] sm:$0xff]  ;;  %v358_v34 = vld [vmem:[#allocation11 + $0x60] sm:$0xff]  ;;  %v1522_v35 = vpack.c.bf16 %v376_v30, %v366_v28  ;;  %v369_v36 = vld [vmem:[#allocation11 + $0xb8] sm:$0xff]  ;;  %s1441_s22 = sshll.u32 %s1912_s12, 4  ;;  %vm1433_vm15 = vcmask 113728   ;;  %s1442_s22 = int_to_ptr.vmem [resolvable:$true] %s1441_s22 }
  0x77   :  { %1511 = vmatpush1.bf16.msk.msra.mxu0 %vm2030_vm2, %v1509_v15  ;;  %269 = vmatprep.mubr.f32.mxu0 %v1906_v0  ;;  %v379_v37 = vld [vmem:[#allocation11 + $0x108] sm:$0xff]  ;;  %v1526_v39 = vpack.c.bf16 %v358_v34, %v348_v33  ;;  %v368_v41 = vld [vmem:[#allocation11 + $0xb0] sm:$0xff]  ;;  %v378_v42 = vld [vmem:[#allocation11 + $0x100] sm:$0xff]  ;;  %s1862_s23 = scalar_lea.vmem %s1442_s22, 128  ;;  %p1867_p7 = scmp.lt.s32.totalorder %s1442_s22, %s1442_s22 }
  0x78   :  { %1512 = vmatprep.subr.bf16.mxu0 %v1908_v31  ;;  %1519 = vmatpush1.bf16.msra.mxu1 %v1518_v24  ;;  %v387_v38 = vld [vmem:[#allocation11 + $0x148] sm:$0x1]  ;;  %v1528_v40 = vpack.c.bf16 %v379_v37, %v369_v36  ;;  %v386_v43 = vld [vmem:[#allocation11 + $0x140] sm:$0x1]  ;;  %v1530_v44 = vpack.c.bf16 %v378_v42, %v368_v41  ;;  %v389_v45 = vld [vmem:[#allocation11 + $0x158] sm:$0x1]  ;;  %p1863_p6 = scmp.ne.s32.totalorder %s1442_s22, %s1862_s23  ;;  %p1868_p8 = scmp.lt.s32.totalorder %s1862_s23, %s1862_s23 }
  0x79   :  { %1521 = vmatprep.subr.bf16.mxu1 %v1520_v27  ;;  %v388_v46 = vld [vmem:[#allocation11 + $0x150] sm:$0x1]  ;;  %v351_v47 = vld [vmem:[#allocation11 + $0x28] sm:$0xff]  ;;  %v361_v48 = vld [vmem:[#allocation11 + $0x78] sm:$0xff] }
  0x7a   :  { %1458 = vmatmul.mubr.msk.f32.vlgmr.msra.gmra.mrb[2].mxu0 %vm114_vm3, %v102_v12  ;;  %v353_v49 = vld [vmem:[#allocation11 + $0x38] sm:$0xff]  ;;  %v1532_v50 = vpack.c.bf16 %v361_v48, %v351_v47  ;;  %v363_v51 = vld [vmem:[#allocation11 + $0x88] sm:$0xff]  ;;  %v350_v53 = vld [vmem:[#allocation11 + $0x20] sm:$0xff]  ;;  %p1869_p9 = por %p1868_p8, %p1867_p7 }
  0x7b   :  { %1515 = vmatpush3.bf16.msk.msra.mxu0 %vm2030_vm2, %v1513_v29  ;;  %1490 = vmatprep.mubr.msk.f32.mxu0 %vm1909_vm4, %v1906_v0  ;;  %v1540_v52 = vpack.c.bf16 %v363_v51, %v353_v49  ;;  %v360_v54 = vld [vmem:[#allocation11 + $0x70] sm:$0xff]  ;;  %v362_v56 = vld [vmem:[#allocation11 + $0x80] sm:$0xff]  ;;  %v371_v57 = vld [vmem:[#allocation11 + $0xc8] sm:$0xff] }
  0x7c   :  { %1525 = vmatprep.subr.bf16.mxu0 %v1524_v32  ;;  %1523 = vmatpush1.bf16.msra.mxu1 %v1522_v35  ;;  %v352_v55 = vld [vmem:[#allocation11 + $0x30] sm:$0xff]  ;;  %v381_v58 = vld [vmem:[#allocation11 + $0x118] sm:$0xff]  ;;  %v383_v60 = vld [vmem:[#allocation11 + $0x128] sm:$0xff]  ;;  %v1534_v61 = vpack.c.bf16 %v360_v54, %v350_v53  ;;  %p1870_p10 = pnand %p1869_p9, %p1863_p6 }
  0x7d   :  { %1461 = vmatprep.subr.msk.mxu1 %vm118_vm0, %v387_v38  ;;  %v373_v59 = vld [vmem:[#allocation11 + $0xd8] sm:$0xff]  ;;  %v1542_v62 = vpack.c.bf16 %v362_v56, %v352_v55  ;;  %v370_v63 = vld [vmem:[#allocation11 + $0xc0] sm:$0xff]  ;;  %v1536_v1 = vpack.c.bf16 %v381_v58, %v371_v57  ;;  %v380_v3 = vld [vmem:[#allocation11 + $0x110] sm:$0xff] }
  0x7e   :  { %1491 = vmatmul.mubr.msk.f32.vlgmr.msra.gmra.mrb[4].mxu0 %vm114_vm3, %v102_v12  ;;  %v1544_v2 = vpack.c.bf16 %v383_v60, %v373_v59  ;;  %v372_v4 = vld [vmem:[#allocation11 + $0xd0] sm:$0xff]  ;;  %v382_v5 = vld [vmem:[#allocation11 + $0x120] sm:$0xff]  ;;  %v1538_v8 = vpack.c.bf16 %v380_v3, %v370_v63  ;;  %v391_v10 = vld [vmem:[#allocation11 + $0x168] sm:$0x1] }
  0x7f   :  { %1527 = vmatpush1.bf16.msra.mxu0 %v1526_v39  ;;  %565 = vmatprep.mubr.f32.mxu0 %v1906_v0  ;;  %v1546_v9 = vpack.c.bf16 %v382_v5, %v372_v4  ;;  %v393_v11 = vld [vmem:[#allocation11 + $0x178] sm:$0x1]  ;;  %v355_v12 = vld [vmem:[#allocation11 + $0x48] sm:$0xff]  ;;  %v390_v15 = vld [vmem:[#allocation11 + $0x160] sm:$0x1] }
  0x80   :  { %1529 = vmatprep.subr.bf16.mxu0 %v1528_v40  ;;  %1462 = vmatpush1.msk.msra.mxu1 %vm118_vm0, %v386_v43  ;;  %v365_v13 = vld [vmem:[#allocation11 + $0x98] sm:$0xff]  ;;  %v791_v17 = vld [vmem:[#allocation8 + $0x30] sm:$0xff]  ;;  %v364_v20 = vld [vmem:[#allocation11 + $0x90] sm:$0xff] }
  0x81   :  { %1533 = vmatprep.subr.bf16.mxu1 %v1532_v50  ;;  %v786_v16 = vld [vmem:[#allocation8 + $0x8] sm:$0xff]  ;;  %v354_v18 = vld [vmem:[#allocation11 + $0x40] sm:$0xff]  ;;  %v785_v21 = vld [vmem:[#allocation8] sm:$0xff]  ;;  %v1548_v26 = vpack.c.bf16 %v365_v13, %v355_v12 }
  0x82   :  { %v790_v22 = vld [vmem:[#allocation8 + $0x28] sm:$0xff]  ;;  %v392_v23 = vld [vmem:[#allocation11 + $0x170] sm:$0x1]  ;;  %v375_v24 = vld [vmem:[#allocation11 + $0xe8] sm:$0xff]  ;;  %v1556_v27 = vpack.c.bf16 %v791_v17, %v786_v16  ;;  %v1550_v32 = vpack.c.bf16 %v364_v20, %v354_v18 }
  0x83   :  { %1531 = vmatpush1.bf16.msra.mxu0 %v1530_v44  ;;  %v385_v25 = vld [vmem:[#allocation11 + $0x138] sm:$0xff]  ;;  %v788_v28 = vld [vmem:[#allocation8 + $0x18] sm:$0xff]  ;;  %v793_v29 = vld [vmem:[#allocation8 + $0x40] sm:$0xff]  ;;  %v1558_v33 = vpack.c.bf16 %v790_v22, %v785_v21 }
  0x84   :  { %1464 = vmatprep.subr.msk.mxu0 %vm118_vm0, %v389_v45  ;;  %v374_v34 = vld [vmem:[#allocation11 + $0xe0] sm:$0xff]  ;;  %v1552_v36 = vpack.c.bf16 %v385_v25, %v375_v24  ;;  %v384_v37 = vld [vmem:[#allocation11 + $0x130] sm:$0xff]  ;;  %v792_v39 = vld [vmem:[#allocation8 + $0x38] sm:$0xff]  ;;  %v1560_v40 = vpack.c.bf16 %v793_v29, %v788_v28 }
  0x85   :  { %v787_v38 = vld [vmem:[#allocation8 + $0x10] sm:$0xff]  ;;  %v1017_v41 = vld [vmem:[#allocation10 + $0x8] sm:$0xff]  ;;  %v1019_v42 = vld [vmem:[#allocation10 + $0x18] sm:$0xff]  ;;  %v1554_v44 = vpack.c.bf16 %v384_v37, %v374_v34 }
  0x86   :  { %v103_v43 = vld [vmem:[#allocation5] sm:$0xff]  ;;  %v1562_v45 = vpack.c.bf16 %v792_v39, %v787_v38  ;;  %v1018_v47 = vld [vmem:[#allocation10 + $0x10] sm:$0xff]  ;;  %v395_v48 = vld [vmem:[#allocation11 + $0x188] sm:$0x1]  ;;  %v1567_v49 = vpack.c.bf16 %v1019_v42, %v1017_v41 }
  0x87   :  { %1465 = vmatpush1.msk.msra.mxu0 %vm118_vm0, %v388_v46  ;;  %v1016_v46 = vld [vmem:[#allocation10] sm:$0xff]  ;;  %v789_v50 = vld [vmem:[#allocation8 + $0x20] sm:$0xff]  ;;  %v794_v51 = vld [vmem:[#allocation8 + $0x48] sm:$0xff] }
  0x88   :  { %1541 = vmatprep.subr.bf16.mxu0 %v1540_v52  ;;  %v1021_v52 = vld [vmem:[#allocation10 + $0x28] sm:$0xff]  ;;  %v1569_v53 = vpack.c.bf16 %v1018_v47, %v1016_v46  ;;  %v1023_v54 = vld [vmem:[#allocation10 + $0x38] sm:$0xff]  ;;  %v394_v57 = vld [vmem:[#allocation11 + $0x180] sm:$0x1]  ;;  %v1565_v60 = vpack.c.bf16 %v794_v51, %v789_v50 }
  0x89   :  { %v1081_v55 = vld [vmem:[#allocation10 + $0x208] sm:$0xff]  ;;  %v1083_v56 = vld [vmem:[#allocation10 + $0x218] sm:$0xff]  ;;  %v1020_v58 = vld [vmem:[#allocation10 + $0x20] sm:$0xff]  ;;  %v1571_v63 = vpack.c.bf16 %v1023_v54, %v1021_v52 }
  0x8a   :  { %v1022_v59 = vld [vmem:[#allocation10 + $0x30] sm:$0xff]  ;;  %v1085_v5 = vld [vmem:[#allocation10 + $0x228] sm:$0xff]  ;;  %v1084_v17 = vld [vmem:[#allocation10 + $0x220] sm:$0xff] }
  0x8b   :  { %v1082_v3 = vld [vmem:[#allocation10 + $0x210] sm:$0xff]  ;;  %v1573_v4 = vpack.c.bf16 %v1022_v59, %v1020_v58  ;;  %v1029_v13 = vld [vmem:[#allocation10 + $0x68] sm:$0xff]  ;;  %v1091_v22 = vld [vmem:[#allocation10 + $0x258] sm:$0xff] }
  0x8c   :  { %v1086_v18 = vld [vmem:[#allocation10 + $0x230] sm:$0xff]  ;;  %v1089_v21 = vld [vmem:[#allocation10 + $0x248] sm:$0xff]  ;;  %v1088_v29 = vld [vmem:[#allocation10 + $0x240] sm:$0xff] }
  0x8d   :  { %v1030_v24 = vld [vmem:[#allocation10 + $0x70] sm:$0xff]  ;;  %v1637_v25 = vpack.c.bf16 %v1086_v18, %v1084_v17  ;;  %v1639_v28 = vpack.c.bf16 %v1091_v22, %v1089_v21  ;;  %v1093_v34 = vld [vmem:[#allocation10 + $0x268] sm:$0xff]  ;;  %v1032_v37 = vld [vmem:[#allocation10 + $0x80] sm:$0xff] }
  0x8e   :  { %v1034_v38 = vld [vmem:[#allocation10 + $0x90] sm:$0xff]  ;;  %v1039_v41 = vld [vmem:[#allocation10 + $0xb8] sm:$0xff]  ;;  %v1097_v46 = vld [vmem:[#allocation10 + $0x288] sm:$0xff] }
  0x8f   :  { %v1099_v47 = vld [vmem:[#allocation10 + $0x298] sm:$0xff]  ;;  %v1038_v50 = vld [vmem:[#allocation10 + $0xb0] sm:$0xff]  ;;  %v1041_v52 = vld [vmem:[#allocation10 + $0xc8] sm:$0xff] }
  0x90   :  { %v1647_v54 = vpack.c.bf16 %v1099_v47, %v1097_v46  ;;  %v1101_v58 = vld [vmem:[#allocation10 + $0x2a8] sm:$0xff]  ;;  %v1103_v59 = vld [vmem:[#allocation10 + $0x2b8] sm:$0xff]  ;;  %v1106_v21 = vld [vmem:[#allocation10 + $0x2d0] sm:$0xff] }
  0x91   :  { %v1051_v17 = vld [vmem:[#allocation10 + $0x118] sm:$0xff]  ;;  %v1114_v46 = vld [vmem:[#allocation10 + $0x310] sm:$0xff] }
 0x149   :  { %v2056_v6 = vpop.f32.mrb[0].mxu0 }
 0x14a   :  { %v2058_v7 = vpop.f32.mrb[1].mxu0  ;;  %1463 = vmatmul.mubr.msk.f32.vlgmr.msra.gmra.mrb[0].mxu1 %vm396_vm5, %v2056_v6  ;;  %1466 = vmatmul.mubr.msk.f32.vlgmr.msra.gmra.mrb[6].mxu0 %vm396_vm5, %v2056_v6 }
 0x14b   :  { %1535 = vmatpush1.bf16.msra.mxu1 %v1534_v61  ;;  %1543 = vmatpush1.bf16.msra.mxu0 %v1542_v62  ;;  %v1025_v61 = vld [vmem:[#allocation10 + $0x48] sm:$0xff]  ;;  %v1027_v62 = vld [vmem:[#allocation10 + $0x58] sm:$0xff] }
 0x14c   :  { %1537 = vmatprep.subr.bf16.mxu1 %v1536_v1  ;;  %1545 = vmatprep.subr.bf16.mxu0 %v1544_v2  ;;  %v1631_v1 = vpack.c.bf16 %v1083_v56, %v1081_v55  ;;  %v1080_v2 = vld [vmem:[#allocation10 + $0x200] sm:$0xff]  ;;  %v1098_v56 = vld [vmem:[#allocation10 + $0x290] sm:$0xff] }
 0x14d   :  { %636 = vmatprep.mubr.f32.mxu1 %v1906_v0  ;;  %707 = vmatprep.mubr.f32.mxu0 %v1906_v0  ;;  %v2066_v14 = vpop.f32.mrb[2].mxu0  ;;  %v1633_v12 = vpack.c.bf16 %v1082_v3, %v1080_v2  ;;  %v1096_v55 = vld [vmem:[#allocation10 + $0x280] sm:$0xff]  ;;  %v1047_v2 = vld [vmem:[#allocation10 + $0xf8] sm:$0xff]  ;;  %v1651_v3 = vpack.c.bf16 %v1103_v59, %v1101_v58  ;;  %v1118_v58 = vld [vmem:[#allocation10 + $0x330] sm:$0xff] }
 0x14e   :  { %v2068_v19 = vpop.f32.mrb[3].mxu0 }
 0x14f   :  { %1539 = vmatpush1.bf16.msra.mxu1 %v1538_v8  ;;  %1547 = vmatpush1.bf16.msra.mxu0 %v1546_v9  ;;  %v1087_v8 = vld [vmem:[#allocation10 + $0x238] sm:$0xff]  ;;  %v1575_v9 = vpack.c.bf16 %v1027_v62, %v1025_v61  ;;  %v1040_v61 = vld [vmem:[#allocation10 + $0xc0] sm:$0xff]  ;;  %v1042_v62 = vld [vmem:[#allocation10 + $0xd0] sm:$0xff] }
 0x150   :  { %1467 = vmatprep.subr.msk.mxu1 %vm118_vm0, %v391_v10  ;;  %1470 = vmatprep.subr.msk.mxu0 %vm118_vm0, %v393_v11  ;;  %v1024_v10 = vld [vmem:[#allocation10 + $0x40] sm:$0xff]  ;;  %v1026_v11 = vld [vmem:[#allocation10 + $0x50] sm:$0xff]  ;;  %v1635_v16 = vpack.c.bf16 %v1087_v8, %v1085_v5  ;;  %v1593_v8 = vpack.c.bf16 %v1042_v62, %v1040_v61  ;;  %v1123_v61 = vld [vmem:[#allocation10 + $0x358] sm:$0xff] }
 0x151   :  { %v2072_v30 = vpop.f32.mrb[4].mxu0  ;;  %v1577_v20 = vpack.c.bf16 %v1026_v11, %v1024_v10  ;;  %v1102_v5 = vld [vmem:[#allocation10 + $0x2b0] sm:$0xff]  ;;  %v1107_v10 = vld [vmem:[#allocation10 + $0x2d8] sm:$0xff] }
 0x152   :  { %v1492_v35 = vpop.f32.mrb[5].mxu0 }
 0x153   :  { %1468 = vmatpush1.msk.msra.mxu1 %vm118_vm0, %v390_v15  ;;  %1471 = vmatpush1.msk.msra.mxu0 %vm118_vm0, %v392_v23  ;;  %v1031_v15 = vld [vmem:[#allocation10 + $0x78] sm:$0xff]  ;;  %v1028_v23 = vld [vmem:[#allocation10 + $0x60] sm:$0xff] }
 0x154   :  { %1469 = vmatmul.mubr.msk.f32.vlgmr.msra.gmra.mrb[2].mxu1 %vm396_vm5, %v2056_v6  ;;  %1472 = vmatmul.mubr.msk.f32.vlgmr.msra.gmra.mrb[8].mxu0 %vm396_vm5, %v2056_v6  ;;  %v1095_v35 = vld [vmem:[#allocation10 + $0x278] sm:$0xff] }
 0x155   :  { %1549 = vmatprep.subr.bf16.mxu1 %v1548_v26  ;;  %1557 = vmatprep.subr.bf16.mxu0 %v1556_v27  ;;  %v1033_v26 = vld [vmem:[#allocation10 + $0x88] sm:$0xff]  ;;  %v1035_v27 = vld [vmem:[#allocation10 + $0x98] sm:$0xff]  ;;  %v1643_v42 = vpack.c.bf16 %v1095_v35, %v1093_v34  ;;  %v1110_v34 = vld [vmem:[#allocation10 + $0x2f0] sm:$0xff] }
 0x156   :  { %1551 = vmatpush1.bf16.msra.mxu1 %v1550_v32  ;;  %1559 = vmatpush1.bf16.msra.mxu0 %v1558_v33  ;;  %v1090_v32 = vld [vmem:[#allocation10 + $0x250] sm:$0xff]  ;;  %v1581_v33 = vpack.c.bf16 %v1030_v24, %v1028_v23  ;;  %v1111_v23 = vld [vmem:[#allocation10 + $0x2f8] sm:$0xff] }
 0x157   :  { %863 = vmatprep.mubr.f32.mxu0 %v1906_v0  ;;  %1553 = vmatprep.subr.bf16.mxu1 %v1552_v36  ;;  %v1583_v36 = vpack.c.bf16 %v1035_v27, %v1033_v26  ;;  %v1641_v39 = vpack.c.bf16 %v1090_v32, %v1088_v29  ;;  %v1050_v26 = vld [vmem:[#allocation10 + $0x110] sm:$0xff]  ;;  %v1055_v29 = vld [vmem:[#allocation10 + $0x138] sm:$0xff] }
 0x158   :  { %1561 = vmatprep.subr.bf16.mxu0 %v1560_v40  ;;  %778 = vmatprep.mubr.f32.mxu1 %v1906_v0  ;;  %v1037_v40 = vld [vmem:[#allocation10 + $0xa8] sm:$0xff] }
 0x159   :  { %1476 = vmatmul.mubr.msk.f32.vlgmr.msra.gmra.mrb[10].mxu0 %vm795_vm6, %v103_v43 }
 0x15a   :  { %1555 = vmatpush1.bf16.msra.mxu1 %v1554_v44  ;;  %1563 = vmatpush1.bf16.msra.mxu0 %v1562_v45  ;;  %v1094_v44 = vld [vmem:[#allocation10 + $0x270] sm:$0xff]  ;;  %v1585_v45 = vpack.c.bf16 %v1034_v38, %v1032_v37  ;;  %v1115_v37 = vld [vmem:[#allocation10 + $0x318] sm:$0xff] }
 0x15b   :  { %934 = vmatprep.mubr.f32.mxu0 %v1906_v0  ;;  %1473 = vmatprep.subr.msk.mxu1 %vm118_vm0, %v395_v48  ;;  %v1587_v48 = vpack.c.bf16 %v1039_v41, %v1037_v40  ;;  %v1054_v40 = vld [vmem:[#allocation10 + $0x130] sm:$0xff] }
 0x15c   :  { %1568 = vmatprep.subr.bf16.mxu0 %v1567_v49  ;;  %v1036_v49 = vld [vmem:[#allocation10 + $0xa0] sm:$0xff] }
 0x15d   :  { %1477 = vmatmul.mubr.msk.f32.vlgmr.msra.gmra.mrb[12].mxu0 %vm795_vm6, %v103_v43 }
 0x15e   :  { %1474 = vmatpush1.msk.msra.mxu1 %vm118_vm0, %v394_v57  ;;  %1570 = vmatpush1.bf16.msra.mxu0 %v1569_v53  ;;  %v1043_v53 = vld [vmem:[#allocation10 + $0xd8] sm:$0xff]  ;;  %v1589_v57 = vpack.c.bf16 %v1038_v50, %v1036_v49 }
 0x15f   :  { %1475 = vmatmul.mubr.msk.f32.vlgmr.msra.gmra.mrb[4].mxu1 %vm396_vm5, %v2056_v6  ;;  %1564 = vmatprep.subr.bf16.mxu1 %v1908_v31  ;;  %v1579_v31 = vpack.c.bf16 %v1031_v15, %v1029_v13  ;;  %v1046_v13 = vld [vmem:[#allocation10 + $0xf0] sm:$0xff]  ;;  %v1119_v49 = vld [vmem:[#allocation10 + $0x338] sm:$0xff] }
 0x160   :  { %1566 = vmatpush3.bf16.msra.mxu1 %v1565_v60  ;;  %1497 = vmatprep.mubr.msk.f32.mxu1 %vm1909_vm4, %v1906_v0  ;;  %v1591_v60 = vpack.c.bf16 %v1043_v53, %v1041_v52  ;;  %v1058_v52 = vld [vmem:[#allocation10 + $0x150] sm:$0xff] }
 0x161   :  { %1572 = vmatprep.subr.bf16.mxu0 %v1571_v63  ;;  %1632 = vmatprep.subr.bf16.mxu1 %v1631_v1  ;;  %v1649_v63 = vpack.c.bf16 %v1098_v56, %v1096_v55  ;;  %v1045_v1 = vld [vmem:[#allocation10 + $0xe8] sm:$0xff]  ;;  %v1063_v55 = vld [vmem:[#allocation10 + $0x178] sm:$0xff] }
 0x162   :  { %1574 = vmatpush1.bf16.msra.mxu0 %v1573_v4  ;;  %v1100_v4 = vld [vmem:[#allocation10 + $0x2a0] sm:$0xff]  ;;  %v1595_v11 = vpack.c.bf16 %v1047_v2, %v1045_v1  ;;  %v1062_v1 = vld [vmem:[#allocation10 + $0x170] sm:$0xff] }
 0x163   :  { %1498 = vmatmul.mubr.msk.f32.vlgmr.msra.gmra.mrb[6].mxu1 %vm795_vm6, %v103_v43  ;;  %1576 = vmatprep.subr.bf16.mxu0 %v1575_v9  ;;  %v1092_v43 = vld [vmem:[#allocation10 + $0x260] sm:$0xff]  ;;  %v1105_v9 = vld [vmem:[#allocation10 + $0x2c8] sm:$0xff]  ;;  %v1653_v15 = vpack.c.bf16 %v1102_v5, %v1100_v4  ;;  %v1122_v5 = vld [vmem:[#allocation10 + $0x350] sm:$0xff] }
 0x164   :  { %1634 = vmatpush1.bf16.msra.mxu1 %v1633_v12  ;;  %v1645_v51 = vpack.c.bf16 %v1094_v44, %v1092_v43  ;;  %v1044_v12 = vld [vmem:[#allocation10 + $0xe0] sm:$0xff]  ;;  %v1655_v18 = vpack.c.bf16 %v1107_v10, %v1105_v9  ;;  %v1059_v43 = vld [vmem:[#allocation10 + $0x158] sm:$0xff]  ;;  %v1065_v10 = vld [vmem:[#allocation10 + $0x188] sm:$0xff] }
 0x165   :  { %1636 = vmatprep.subr.bf16.mxu1 %v1635_v16  ;;  %v1049_v16 = vld [vmem:[#allocation10 + $0x108] sm:$0xff]  ;;  %v1597_v22 = vpack.c.bf16 %v1046_v13, %v1044_v12  ;;  %v1120_v4 = vld [vmem:[#allocation10 + $0x340] sm:$0xff] }
 0x166   :  { %1578 = vmatpush1.bf16.msra.mxu0 %v1577_v20  ;;  %v1104_v20 = vld [vmem:[#allocation10 + $0x2c0] sm:$0xff]  ;;  %v1599_v24 = vpack.c.bf16 %v1051_v17, %v1049_v16  ;;  %v1673_v9 = vpack.c.bf16 %v1122_v5, %v1120_v4  ;;  %v1125_v12 = vld [vmem:[#allocation10 + $0x368] sm:$0xff]  ;;  %v1066_v17 = vld [vmem:[#allocation10 + $0x190] sm:$0xff] }
 0x167   :  { %1580 = vmatprep.subr.bf16.mxu0 %v1579_v31  ;;  %v1109_v31 = vld [vmem:[#allocation10 + $0x2e8] sm:$0xff]  ;;  %v1657_v27 = vpack.c.bf16 %v1106_v21, %v1104_v20  ;;  %v1064_v16 = vld [vmem:[#allocation10 + $0x180] sm:$0xff]  ;;  %v1147_v5 = vld [vmem:[#allocation10 + $0x418] sm:$0xff] }
 0x168   :  { %1638 = vmatpush1.bf16.msra.mxu1 %v1637_v25  ;;  %v1048_v25 = vld [vmem:[#allocation10 + $0x100] sm:$0xff]  ;;  %v1659_v32 = vpack.c.bf16 %v1111_v23, %v1109_v31  ;;  %v1617_v20 = vpack.c.bf16 %v1066_v17, %v1064_v16  ;;  %v1069_v31 = vld [vmem:[#allocation10 + $0x1a8] sm:$0xff] }
 0x169   :  { %1640 = vmatprep.subr.bf16.mxu1 %v1639_v28  ;;  %v1053_v28 = vld [vmem:[#allocation10 + $0x128] sm:$0xff]  ;;  %v1601_v35 = vpack.c.bf16 %v1050_v26, %v1048_v25  ;;  %v1124_v21 = vld [vmem:[#allocation10 + $0x360] sm:$0xff]  ;;  %v1131_v26 = vld [vmem:[#allocation10 + $0x398] sm:$0xff] }
 0x16a   :  { %1582 = vmatpush1.bf16.msra.mxu0 %v1581_v33  ;;  %v1108_v33 = vld [vmem:[#allocation10 + $0x2e0] sm:$0xff]  ;;  %v1603_v38 = vpack.c.bf16 %v1055_v29, %v1053_v28  ;;  %v1129_v25 = vld [vmem:[#allocation10 + $0x388] sm:$0xff] }
 0x16b   :  { %1584 = vmatprep.subr.bf16.mxu0 %v1583_v36  ;;  %v1113_v36 = vld [vmem:[#allocation10 + $0x308] sm:$0xff]  ;;  %v1661_v41 = vpack.c.bf16 %v1110_v34, %v1108_v33  ;;  %v1679_v28 = vpack.c.bf16 %v1131_v26, %v1129_v25  ;;  %v1068_v29 = vld [vmem:[#allocation10 + $0x1a0] sm:$0xff] }
 0x16c   :  { %1642 = vmatpush1.bf16.msra.mxu1 %v1641_v39  ;;  %v1052_v39 = vld [vmem:[#allocation10 + $0x120] sm:$0xff]  ;;  %v1663_v44 = vpack.c.bf16 %v1115_v37, %v1113_v36  ;;  %v1073_v37 = vld [vmem:[#allocation10 + $0x1c8] sm:$0xff] }
 0x16d   :  { %1644 = vmatprep.subr.bf16.mxu1 %v1643_v42  ;;  %v1057_v42 = vld [vmem:[#allocation10 + $0x148] sm:$0xff]  ;;  %v1605_v47 = vpack.c.bf16 %v1054_v40, %v1052_v39  ;;  %v1128_v33 = vld [vmem:[#allocation10 + $0x380] sm:$0xff] }
 0x16e   :  { %1586 = vmatpush1.bf16.msra.mxu0 %v1585_v45  ;;  %v1112_v45 = vld [vmem:[#allocation10 + $0x300] sm:$0xff]  ;;  %v1607_v50 = vpack.c.bf16 %v1059_v43, %v1057_v42  ;;  %v1133_v39 = vld [vmem:[#allocation10 + $0x3a8] sm:$0xff]  ;;  %v1074_v43 = vld [vmem:[#allocation10 + $0x1d0] sm:$0xff] }
 0x16f   :  { %1588 = vmatprep.subr.bf16.mxu0 %v1587_v48  ;;  %v1117_v48 = vld [vmem:[#allocation10 + $0x328] sm:$0xff]  ;;  %v1665_v53 = vpack.c.bf16 %v1114_v46, %v1112_v45  ;;  %v1072_v42 = vld [vmem:[#allocation10 + $0x1c0] sm:$0xff] }
 0x170   :  { %1646 = vmatpush1.bf16.msra.mxu1 %v1645_v51  ;;  %v1056_v51 = vld [vmem:[#allocation10 + $0x140] sm:$0xff]  ;;  %v1667_v56 = vpack.c.bf16 %v1119_v49, %v1117_v48  ;;  %v1625_v45 = vpack.c.bf16 %v1074_v43, %v1072_v42  ;;  %v1077_v49 = vld [vmem:[#allocation10 + $0x1e8] sm:$0xff] }
 0x171   :  { %1648 = vmatprep.subr.bf16.mxu1 %v1647_v54  ;;  %v1061_v54 = vld [vmem:[#allocation10 + $0x168] sm:$0xff]  ;;  %v1609_v59 = vpack.c.bf16 %v1058_v52, %v1056_v51  ;;  %v1132_v46 = vld [vmem:[#allocation10 + $0x3a0] sm:$0xff] }
 0x172   :  { %1590 = vmatpush1.bf16.msra.mxu0 %v1589_v57  ;;  %v1116_v57 = vld [vmem:[#allocation10 + $0x320] sm:$0xff]  ;;  %v1611_v62 = vpack.c.bf16 %v1063_v55, %v1061_v54  ;;  %v1137_v51 = vld [vmem:[#allocation10 + $0x3c8] sm:$0xff]  ;;  %v1078_v55 = vld [vmem:[#allocation10 + $0x1f0] sm:$0xff] }
 0x173   :  { %1592 = vmatprep.subr.bf16.mxu0 %v1591_v60  ;;  %v1121_v60 = vld [vmem:[#allocation10 + $0x348] sm:$0xff]  ;;  %v1669_v2 = vpack.c.bf16 %v1118_v58, %v1116_v57  ;;  %v1076_v54 = vld [vmem:[#allocation10 + $0x1e0] sm:$0xff] }
 0x174   :  { %1650 = vmatpush1.bf16.msra.mxu1 %v1649_v63  ;;  %v1060_v63 = vld [vmem:[#allocation10 + $0x160] sm:$0xff]  ;;  %v1629_v57 = vpack.c.bf16 %v1078_v55, %v1076_v54  ;;  %v1145_v4 = vld [vmem:[#allocation10 + $0x408] sm:$0xff] }
 0x175   :  { %1652 = vmatprep.subr.bf16.mxu1 %v1651_v3  ;;  %v1671_v3 = vpack.c.bf16 %v1123_v61, %v1121_v60  ;;  %v1136_v58 = vld [vmem:[#allocation10 + $0x3c0] sm:$0xff]  ;;  %v1141_v61 = vld [vmem:[#allocation10 + $0x3e8] sm:$0xff] }
 0x176   :  { %1594 = vmatpush1.bf16.msra.mxu0 %v1593_v8  ;;  %v1613_v8 = vpack.c.bf16 %v1062_v1, %v1060_v63  ;;  %v1140_v1 = vld [vmem:[#allocation10 + $0x3e0] sm:$0xff] }
 0x177   :  { %1596 = vmatprep.subr.bf16.mxu0 %v1595_v11  ;;  %v1067_v11 = vld [vmem:[#allocation10 + $0x198] sm:$0xff] }
 0x178   :  { %1654 = vmatpush1.bf16.msra.mxu1 %v1653_v15  ;;  %v1615_v13 = vpack.c.bf16 %v1067_v11, %v1065_v10  ;;  %v1127_v15 = vld [vmem:[#allocation10 + $0x378] sm:$0xff] }
 0x179   :  { %1656 = vmatprep.subr.bf16.mxu1 %v1655_v18  ;;  %v1675_v18 = vpack.c.bf16 %v1127_v15, %v1125_v12 }
 0x17a   :  { %1598 = vmatpush1.bf16.msra.mxu0 %v1597_v22  ;;  %v1126_v22 = vld [vmem:[#allocation10 + $0x370] sm:$0xff] }
 0x17b   :  { %1600 = vmatprep.subr.bf16.mxu0 %v1599_v24  ;;  %v1677_v23 = vpack.c.bf16 %v1126_v22, %v1124_v21  ;;  %v1071_v24 = vld [vmem:[#allocation10 + $0x1b8] sm:$0xff] }
 0x17c   :  { %1658 = vmatpush1.bf16.msra.mxu1 %v1657_v27  ;;  %v1619_v27 = vpack.c.bf16 %v1071_v24, %v1069_v31  ;;  %v1144_v31 = vld [vmem:[#allocation10 + $0x400] sm:$0xff] }
 0x17d   :  { %1660 = vmatprep.subr.bf16.mxu1 %v1659_v32  ;;  %v1070_v32 = vld [vmem:[#allocation10 + $0x1b0] sm:$0xff] }
 0x17e   :  { %1602 = vmatpush1.bf16.msra.mxu0 %v1601_v35  ;;  %v1621_v34 = vpack.c.bf16 %v1070_v32, %v1068_v29  ;;  %v1130_v35 = vld [vmem:[#allocation10 + $0x390] sm:$0xff] }
 0x17f   :  { %1604 = vmatprep.subr.bf16.mxu0 %v1603_v38  ;;  %v1681_v36 = vpack.c.bf16 %v1130_v35, %v1128_v33  ;;  %v1075_v38 = vld [vmem:[#allocation10 + $0x1d8] sm:$0xff] }
 0x180   :  { %1662 = vmatpush1.bf16.msra.mxu1 %v1661_v41  ;;  %v1623_v40 = vpack.c.bf16 %v1075_v38, %v1073_v37  ;;  %v1135_v41 = vld [vmem:[#allocation10 + $0x3b8] sm:$0xff] }
 0x181   :  { %1664 = vmatprep.subr.bf16.mxu1 %v1663_v44  ;;  %v1683_v44 = vpack.c.bf16 %v1135_v41, %v1133_v39 }
 0x182   :  { %1606 = vmatpush1.bf16.msra.mxu0 %v1605_v47  ;;  %v1134_v47 = vld [vmem:[#allocation10 + $0x3b0] sm:$0xff] }
 0x183   :  { %1608 = vmatprep.subr.bf16.mxu0 %v1607_v50  ;;  %v1685_v48 = vpack.c.bf16 %v1134_v47, %v1132_v46  ;;  %v1079_v50 = vld [vmem:[#allocation10 + $0x1f8] sm:$0xff] }
 0x184   :  { %1666 = vmatpush1.bf16.msra.mxu1 %v1665_v53  ;;  %v1627_v52 = vpack.c.bf16 %v1079_v50, %v1077_v49  ;;  %v1139_v53 = vld [vmem:[#allocation10 + $0x3d8] sm:$0xff] }
 0x185   :  { %1668 = vmatprep.subr.bf16.mxu1 %v1667_v56  ;;  %v1687_v56 = vpack.c.bf16 %v1139_v53, %v1137_v51 }
 0x186   :  { %1610 = vmatpush1.bf16.msra.mxu0 %v1609_v59  ;;  %v1138_v59 = vld [vmem:[#allocation10 + $0x3d0] sm:$0xff] }
 0x187   :  { %1612 = vmatprep.subr.bf16.mxu0 %v1611_v62  ;;  %v1689_v60 = vpack.c.bf16 %v1138_v59, %v1136_v58  ;;  %v1143_v62 = vld [vmem:[#allocation10 + $0x3f8] sm:$0xff] }
 0x188   :  { %1670 = vmatpush1.bf16.msra.mxu1 %v1669_v2  ;;  %v1691_v63 = vpack.c.bf16 %v1143_v62, %v1141_v61  ;;  %v1142_v2 = vld [vmem:[#allocation10 + $0x3f0] sm:$0xff] }
 0x189   :  { %1672 = vmatprep.subr.bf16.mxu1 %v1671_v3  ;;  %v1693_v3 = vpack.c.bf16 %v1142_v2, %v1140_v1 }
 0x18a   :  { %1614 = vmatpush1.bf16.msra.mxu0 %v1613_v8  ;;  %v1695_v8 = vpack.c.bf16 %v1147_v5, %v1145_v4 }
 0x18b   :  { %1616 = vmatprep.subr.bf16.mxu0 %v1615_v13 }
 0x18c   :  { %1674 = vmatpush1.bf16.msra.mxu1 %v1673_v9 }
 0x18d   :  { %1676 = vmatprep.subr.bf16.mxu1 %v1675_v18 }
 0x18e   :  { %1618 = vmatpush1.bf16.msra.mxu0 %v1617_v20 }
 0x18f   :  { %1620 = vmatprep.subr.bf16.mxu0 %v1619_v27 }
 0x190   :  { %1678 = vmatpush1.bf16.msra.mxu1 %v1677_v23  ;;  %v1146_v23 = vld [vmem:[#allocation10 + $0x410] sm:$0xff] }
 0x191   :  { %1680 = vmatprep.subr.bf16.mxu1 %v1679_v28  ;;  %v1697_v29 = vpack.c.bf16 %v1146_v23, %v1144_v31 }
 0x192   :  { %1622 = vmatpush1.bf16.msra.mxu0 %v1621_v34 }
 0x193   :  { %1624 = vmatprep.subr.bf16.mxu0 %v1623_v40 }
 0x194   :  { %1682 = vmatpush1.bf16.msra.mxu1 %v1681_v36 }
 0x195   :  { %1684 = vmatprep.subr.bf16.mxu1 %v1683_v44 }
 0x196   :  { %1626 = vmatpush1.bf16.msra.mxu0 %v1625_v45 }
 0x197   :  { %1628 = vmatprep.subr.bf16.mxu0 %v1627_v52 }
 0x198   :  { %1686 = vmatpush1.bf16.msra.mxu1 %v1685_v48 }
 0x199   :  { %1688 = vmatprep.subr.bf16.mxu1 %v1687_v56 }
 0x19a   :  { %1630 = vmatpush1.bf16.msra.mxu0 %v1629_v57 }
 0x19c   :  { %1690 = vmatpush1.bf16.msra.mxu1 %v1689_v60 }
 0x19d   :  { %1692 = vmatprep.subr.bf16.mxu1 %v1691_v63 }
 0x1a0   :  { %1694 = vmatpush1.bf16.msra.mxu1 %v1693_v3 }
 0x1a1   :  { %1696 = vmatprep.subr.bf16.mxu1 %v1695_v8 }
 0x21d   :  { %v496_v9 = vpop.f32.mrb[0].mxu1  ;;  %v567_v10 = vpop.f32.mrb[6].mxu0 }
 0x21e   :  { %v498_v11 = vpop.f32.mrb[1].mxu1  ;;  %v569_v12 = vpop.f32.mrb[7].mxu0 }
 0x227   :  { %v638_v13 = vpop.f32.mrb[2].mxu1  ;;  %v709_v15 = vpop.f32.mrb[8].mxu0 }
 0x228   :  { %v640_v16 = vpop.f32.mrb[3].mxu1  ;;  %v711_v17 = vpop.f32.mrb[9].mxu0 }
 0x22c   :  { %v865_v18 = vpop.f32.mrb[10].mxu0 }
 0x22d   :  { %v1011_v20 = vmul.f32 %v865_v18, %v2056_v6  ;;  %v867_v21 = vpop.f32.mrb[11].mxu0 }
 0x22e   :  { %v1012_v22 = vmul.f32 %v867_v21, %v2058_v7 }
 0x230   :  { %v936_v24 = vpop.f32.mrb[12].mxu0  ;;  %1215 = vmatprep.mubr.f32.mxu0 %v1012_v22 }
 0x231   :  { %v1013_v25 = vmul.f32 %v936_v24, %v2066_v14  ;;  %v938_v26 = vpop.f32.mrb[13].mxu0  ;;  %1216 = vmatmul.mubr.f32.vlgmr.msra.gmra.mrb[14].mxu0 %v1011_v20 }
 0x232   :  { %v1014_v27 = vmul.f32 %v938_v26, %v2068_v19  ;;  %v780_v28 = vpop.f32.mrb[4].mxu1 }
 0x233   :  { %v782_v32 = vpop.f32.mrb[5].mxu1 }
 0x234   :  { %1286 = vmatprep.mubr.f32.mxu1 %v1014_v27 }
 0x235   :  { %1287 = vmatmul.mubr.f32.vlgmr.msra.gmra.mrb[8].mxu1 %v1013_v25 }
 0x236   :  { %v1007_v33 = vpop.f32.mrb[6].mxu1  ;;  %1698 = vmatpush1.bf16.msra.mxu1 %v1697_v29  ;;  %1357 = vmatprep.mubr.f32.mxu1 %v1906_v0 }
 0x237   :  { %v1015_v6 = vmul.f32 %v1007_v33, %v2072_v30  ;;  %v1499_v7 = vpop.f32.mrb[7].mxu1 }
 0x23d   :  { %1479 = vmatmul.mubr.msk.f32.vlgmr.msra.gmra.mrb[8].mxu1 %vm795_vm6, %v1015_v6 }
 0x304   :  { %v1217_v34 = vpop.f32.mrb[14].mxu0 }
 0x305   :  { %v1218_v14 = vadd.f32 %v1217_v34, %v496_v9  ;;  %v1219_v35 = vpop.f32.mrb[15].mxu0 }
 0x306   :  { %v1220_v36 = vadd.f32 %v1219_v35, %v498_v11 }
 0x310   :  { %v1359_v37 = vpop.f32.mrb[8].mxu1 }
 0x311   :  { %v1700_v19 = vadd.f32 %v1359_v37, %v1218_v14  ;;  %v1361_v38 = vpop.f32.mrb[9].mxu1 }
 0x312   :  { %v1702_v39 = vadd.f32 %v1361_v38, %v1220_v36 }
 0x313   :  { %v1364_v40 = vmax.f32 %v1700_v19, 0.0 }
 0x314   :  { %v1365_v41 = vmax.f32 %v1702_v39, 0.0 }
 0x315   :  { %v1372_v42 = vmul.f32 %v1364_v40, %v638_v13  ;;  %v1366_v43 = vmul.f32 %v1364_v40, %v567_v10  ;;  %v1375_v44 = vmul.f32 %v1364_v40, %v640_v16  ;;  %v1369_v45 = vmul.f32 %v1364_v40, %v569_v12 }
 0x316   :  { %v1381_v0 = vmul.f32 %v1364_v40, %v711_v17  ;;  %v1378_v46 = vmul.f32 %v1364_v40, %v709_v15  ;;  %v1395_v30 = vmul.f32 %v1365_v41, %v780_v28 }
 0x317   :  { %1373 = vadd.xlane.f32.xlu1 %v1372_v42  ;;  %1367 = vadd.xlane.f32.xlu0 %v1366_v43 }
 0x31b   :  { %1376 = vadd.xlane.f32.xlu1 %v1375_v44  ;;  %1370 = vadd.xlane.f32.xlu0 %v1369_v45 }
 0x31f   :  { %1382 = vadd.xlane.f32.xlu1 %v1381_v0  ;;  %1379 = vadd.xlane.f32.xlu0 %v1378_v46 }
 0x3a4   :  { %v1374_v47 = vpop.xlane.xlu1 %1373  ;;  %v1368_v48 = vpop.xlane.xlu0 %1367 }
 0x3a8   :  { %v1377_v49 = vpop.xlane.xlu1 %1376  ;;  %v1371_v50 = vpop.xlane.xlu0 %1370 }
 0x3a9   :  { %v1385_v51 = vsel %vm1384_vm7, %v1368_v48, %v1371_v50 }
 0x3aa   :  { %v1387_v52 = vsel %vm1386_vm8, %v1385_v51, %v1374_v47 }
 0x3ab   :  { %v1389_v53 = vsel %vm1388_vm9, %v1387_v52, %v1377_v49 }
 0x3ac   :  { %v1383_v54 = vpop.xlane.xlu1 %1382  ;;  %v1380_v55 = vpop.xlane.xlu0 %1379 }
 0x3ad   :  { %v1391_v56 = vsel %vm1390_vm10, %v1389_v53, %v1380_v55 }
 0x3ae   :  { %v1393_v57 = vsel %vm1392_vm11, %v1391_v56, %v1383_v54 }
 0x3af   :  { %v1394_v58 = vadd.f32 %v1393_v57, %v782_v32 }
 0x3b1   :  { %v1400_v59 = vsel %vm1399_vm12, %v1394_v58, -inf }
 0x3b2   :  { %1401 = vmax.xlane.f32.xlu0 %v1400_v59 }
 0x3b6   :  { %1396 = vadd.xlane.f32.xlu0 %v1395_v30 }
 0x43f   :  { %v1402_v60 = vpop.xlane.xlu0 %1401 }
 0x440   :  { %v1403_v61 = vsub.f32 %v1394_v58, %v1402_v60 }
 0x442   :  { %v1404_v62 = vmul.f32 1.442695, %v1403_v61 }
 0x443   :  { %v1397_v63 = vpop.xlane.xlu0 %1396 }
 0x444   :  { %1724 = vpow2.f32 %v1404_v62  ;;  %v1398_v1 = vadd.f32 %v1397_v63, %v782_v32 }
 0x446   :  { %1424 = vrot.lane.b32.xlu0 %v1398_v1, %s1910_s5 }
 0x44e   :  { %v1725_v2 = vpop.eup %1724 }
 0x44f   :  { %v1406_v3 = vsel %vm1399_vm12, %v1725_v2, 0.0 }
 0x450   :  { %1407 = vadd.xlane.f32.xlu1 %v1406_v3 }
 0x4b8   :  { %v1425_v17 = vpop.permute.xlu0 %1424 }
 0x4dd   :  { %v1408_v4 = vpop.xlane.xlu1 %1407 }
 0x4de   :  { %1726 = vlog2.f32 %v1408_v4 }
 0x4df   :  { %1728 = vrcp.f32 %v1408_v4 }
 0x4e8   :  { %v1727_v5 = vpop.eup %1726 }
 0x4e9   :  { %v1729_v8 = vpop.eup %1728  ;;  %v1410_v9 = vmul.f32 0.6931472, %v1727_v5 }
 0x4ea   :  { %v1413_v11 = vmul.f32 %v1729_v8, %v1725_v2 }
 0x4eb   :  { %v1411_v10 = vsub.f32 %v1403_v61, %v1410_v9 }
 0x4ed   :  { %v1414_v12 = vmul.f32 %v1413_v11, %v1411_v10  ;;  %1420 = vst.msk [vmem:[#allocation13] sm:$0xff] %vm1399_vm12, %v1411_v10 }
 0x4ef   :  { %v1415_v13 = vsel %vm1399_vm12, %v1414_v12, 0.0 }
 0x4f0   :  { %1416 = vadd.xlane.f32.xlu1 %v1415_v13 }
 0x501   :  { %1430 = vrot.lane.b32.xlu1 %v1394_v58, %s1911_s0 }
 0x57d   :  { %v1417_v15 = vpop.xlane.xlu1 %1416 }
 0x57e   :  { %v1418_v16 = vsub.f32 0.0, %v1417_v15 }
 0x580   :  { %1422 = vst.msk [vmem:[#allocation13] sm:$0xff] %vm1421_vm13, %v1418_v16 }
 0x581   :  { %v1431_v18 = vpop.permute.xlu1 %1430  ;;  %1428 = vst.msk [vmem:[#allocation13] sm:$0xff] %vm1427_vm14, %v1425_v17 }
 0x582   :  { %1434 = vst.msk [vmem:[#allocation13] sm:$0xff] %vm1433_vm15, %v1431_v18 }
 0x583   :  { %1873 = shalt.err (!%p1870_p10)
}
 0x584   :  { %s1874_s26 = scalar_lea.hbm %s2122_s6, 128 }
 0x585   :  { %p1875_p11 = scmp.ne.s32.totalorder %s2122_s6, %s1874_s26  ;;  %p1878_p12 = scmp.lt.u32.totalorder %s1874_s26, %s2122_s6 }
 0x587   :  { %p1880_p13 = pnand %p1878_p12, %p1875_p11 }
 0x589   :  { %1883 = shalt.err (!%p1880_p13)
}
 0x58a   :  { %1444 = dma.vmem_to_hbm [thread:$0]  %s1442_s22, 128, %s2122_s6, [#allocation4]  }
 0x58b   :  { %1892 = dma.done.wait [#allocation4], 128  }
 0x58c   :  { %1893 = vsyncadd [#allocation4], 4294967168 }
 0x58d   :  { %1448 = vsyncpa [#allocation3], 1 }
 0x58e   :  { %1449 = vsyncpa [#allocation6], 1 }
 0x58f   :  { %1450 = vsyncpa [#allocation9], 1 }
 0x590   :  { %1451 = vsyncpa [#allocation12], 1 }
 0x591   :  { %1452 = vsyncpa [#allocation4], 1 }

</bundles_post_ra>
